<compile_context>
chip_gen: v7x
topology: tpu7x:2x2x1
jax: 0.10.0
libtpu: 0.0.40
codegen_flags: <defaults>
</compile_context>

<pallas_src>
import functools

import jax
import jax.numpy as jnp
import numpy as np
from jax import lax
from jax.experimental import pallas as pl
from jax.experimental.pallas import tpu as pltpu


def _dense_block_kernel(x_ref, rc_ref, w1_ref, b1_ref, w2_ref, b2_ref, out_ref, *,
                        ksize, pad, cin, cmid, cout, h, w, nb):
    """Fused reflect-pad + conv(kxk)+bias+ReLU + conv(1x1)+bias+ReLU for NB images.

    x_ref  : (NB*Cin, H*W)      VMEM  flattened NCHW rows (H*W lane-dense)
    rc_ref : (2, H*W)           VMEM  int32 [row; col] index of each flattened lane
    w1_ref : (KH*KW*Cin*Cmid,)  SMEM  conv1 weights, HWIO flattened (scalar FMAs)
    b1_ref : (Cmid,)            SMEM
    w2_ref : (Cout, Cmid)       VMEM  conv2 (1x1) weight columns
    b2_ref : (Cout, 1)          VMEM
    out_ref: (NB*Cout, H*W)     VMEM  lane-dense output rows
    """
    hw = h * w
    f32 = jnp.float32

    # ---- per-lane (row, col) of the flattened H*W axis (precomputed in the wrapper) ----
    rc = rc_ref[...]
    row = rc[0:1, :]                                          # (1, HW) int32
    col = rc[1:2, :]                                          # (1, HW) int32

    def reflect_j(idx, n):                 # traced reflection (matches ReflectionPad2d)
        idx = jnp.where(idx < 0, -idx, idx)
        return jnp.where(idx >= n, 2 * (n - 1) - idx, idx)

    def reflect_np(idx, n):                # static twin, to enumerate distinct shifts
        idx = np.abs(idx)
        return np.where(idx >= n, 2 * (n - 1) - idx, idx)

    # per-lane source offsets contributed by a vertical / horizontal tap displacement
    roff = {di: (reflect_j(row + di, h) - row) * w for di in range(-pad, pad + 1)}
    coff = {dj: reflect_j(col + dj, w) - col for dj in range(-pad, pad + 1)}
    rr = np.arange(h)[:, None]
    cc = np.arange(w)[None, :]
    roff_np = {di: (reflect_np(rr + di, h) - rr) * w for di in range(-pad, pad + 1)}
    coff_np = {dj: reflect_np(cc + dj, w) - cc for dj in range(-pad, pad + 1)}

    # ---- load, and regroup rows to channel-major (Cin*NB, HW) so each conv1 FMA ----
    # ---- operand (one input channel across all NB images) is a contiguous slab  ----
    x = x_ref[...]                                            # (NB*Cin, HW), image-major
    if nb > 1:
        xc = jnp.concatenate(
            [x[b * cin + c:b * cin + c + 1, :] for c in range(cin) for b in range(nb)],
            axis=0)                                           # (Cin*NB, HW), channel-major
    else:
        xc = x

    # Circular shift along the flattened H*W axis: result[.., p] = xc[.., (p + s) % HW].
    # Lanes whose naive source would wrap are exactly the reflection-corrected lanes,
    # so wrapped values are never consumed.
    shift_cache = {}

    def shifted(s):
        if s not in shift_cache:
            k = s % hw
            shift_cache[s] = xc if k == 0 else jnp.concatenate(
                [xc[:, k:], xc[:, :k]], axis=1)
        return shift_cache[s]

    # ---- conv1: kxk reflect-padded conv as scalar-broadcast FMAs on lane-dense slabs ----
    # TODO(synk): stride > 1 would subsample lanes here; channel counts >= 64 should switch
    # to an im2col bf16 MXU matmul instead of VPU scalar FMAs.
    accs = [jnp.full((nb, hw), b1_ref[m], dtype=f32) for m in range(cmid)]
    for di in range(-pad, pad + 1):
        for dj in range(-pad, pad + 1):
            s0 = di * w + dj
            s_all = [int(s) for s in np.unique(roff_np[di] + coff_np[dj])]
            soff = roff[di] + coff[dj]                        # (1, HW) int32
            tap = shifted(s0)                                 # interior lanes
            for s in s_all:                                   # reflection boundary fixes
                if s != s0:
                    tap = jnp.where(soff == s, shifted(s), tap)
            kk = (di + pad) * ksize + (dj + pad)
            for c in range(cin):
                tc = tap[c * nb:(c + 1) * nb, :]              # (NB, HW) lane-dense slab
                base = (kk * cin + c) * cmid
                for m in range(cmid):
                    accs[m] = accs[m] + w1_ref[base + m] * tc

    # ReLU; conv1 activation stays in vregs (no VMEM round trip, no per-row stores)
    hmid = [jnp.maximum(a, 0.0) for a in accs]                # Cmid x (NB, HW)

    # ---- conv2 (1x1), vectorized over Cout: (Cout, HW) accumulator per image,     ----
    # ---- Cmid lane-broadcast FMAs, one ReLU, one aligned unmasked (Cout, HW) store ----
    w2 = w2_ref[...]                                          # (Cout, Cmid)
    b2 = b2_ref[...]                                          # (Cout, 1)
    for b in range(nb):
        acc2 = jnp.broadcast_to(b2, (cout, hw))
        for m in range(cmid):
            acc2 = acc2 + w2[:, m:m + 1] * hmid[m][b:b + 1, :]
        out_ref[b * cout:(b + 1) * cout, :] = (
            jnp.maximum(acc2, 0.0).astype(out_ref.dtype))


def dense_block_light(x_nchw, w1, b1, w2, b2, *, kernel_size, stride,
                      images_per_step=None):
    """Forward pass of DenseBlock_light.

    x_nchw : (N, Cin, H, W) float32
    w1     : (KH, KW, Cin, Cmid)  HWIO, with Cmid = Cin // 2
    b1     : (Cmid,)
    w2     : (1, 1, Cmid, Cout)
    b2     : (Cout,)
    returns (N, Cout, H, W)  NCHW, matching the PyTorch module.
    """
    assert stride == 1, "kernel implemented/validated for stride=1"
    assert kernel_size % 2 == 1, "symmetric reflection pad requires odd kernel_size"

    n, cin, h, w = x_nchw.shape
    pad = kernel_size // 2
    assert pad < h and pad < w, "reflection padding requires pad < H and pad < W"
    cmid = w1.shape[-1]
    cout = w2.shape[-1]
    hw = h * w

    # Images per grid step: default = whole batch (at tiny shapes one step carries all the
    # work).  For large N pick nb so n//nb stays a multiple of 2 (v7x has 2 TensorCores)
    # and the (nb*cin, hw)/(nb*cout, hw) blocks stay inside the VMEM budget.
    nb = n if images_per_step is None else images_per_step
    assert n % nb == 0
    assert (nb * cin) % 8 == 0 or nb == n
    assert (nb * cout) % 8 == 0 or nb == n
    grid = (n // nb,)

    # All wrapper reshapes below are contiguous (free): no NCHW<->NHWC transpose and no
    # padding pass in HBM.  rc is a tiny precomputed (row, col) index map for the lanes.
    x_flat = x_nchw.reshape(n * cin, hw)
    lane = jnp.arange(hw, dtype=jnp.int32)
    rc = jnp.stack([lane // w, lane % w], axis=0)              # (2, hw) int32
    w1_flat = w1.reshape(-1)                                   # HWIO flattened scalars
    w2_mat = jnp.transpose(w2.reshape(cmid, cout))             # (Cout, Cmid), tiny
    b2_col = b2.reshape(cout, 1)

    kernel = functools.partial(
        _dense_block_kernel, ksize=kernel_size, pad=pad,
        cin=cin, cmid=cmid, cout=cout, h=h, w=w, nb=nb)

    # TODO(synk): for large H*W add an H-tile grid axis with a pad-row halo; size the tile
    # against v7x's 64 MiB physical / 32 MiB scoped VMEM (double-buffered in+out blocks).
    # TODO(synk): on v6e/v7x the taps/activations could be bf16 (f32 accumulation) to halve
    # vreg footprint; keep f32 on v5e (no bf16 VALU).
    out_flat = pl.pallas_call(
        kernel,
        out_shape=jax.ShapeDtypeStruct((n * cout, hw), x_nchw.dtype),
        grid_spec=pltpu.PrefetchScalarGridSpec(
            num_scalar_prefetch=0,
            grid=grid,
            in_specs=[
                pl.BlockSpec((nb * cin, hw), lambda i: (i, 0)),      # x (lane-dense rows)
                pl.BlockSpec((2, hw), lambda i: (0, 0)),             # row/col index map
                pl.BlockSpec(memory_space=pltpu.MemorySpace.SMEM),   # w1 (flat scalars)
                pl.BlockSpec(memory_space=pltpu.MemorySpace.SMEM),   # b1
                pl.BlockSpec((cout, cmid), lambda i: (0, 0)),        # w2 (VMEM columns)
                pl.BlockSpec((cout, 1), lambda i: (0, 0)),           # b2 (VMEM column)
            ],
            out_specs=pl.BlockSpec((nb * cout, hw), lambda i: (i, 0)),
        ),
        compiler_params=pltpu.CompilerParams(
            dimension_semantics=("parallel",),
            vmem_limit_bytes=32 * 1024 * 1024),
    )(x_flat, rc, w1_flat, b1, w2_mat, b2_col)

    # Free (contiguous) reshape back to NCHW - no transpose, no extra HBM pass.
    return out_flat.reshape(n, cout, h, w)


def _reference(x_nchw, w1, b1, w2, b2, *, kernel_size, stride):
    """Pure-JAX reference (lax conv), NCHW in/out, for verification."""
    pad = kernel_size // 2
    xp = jnp.pad(x_nchw, ((0, 0), (0, 0), (pad, pad), (pad, pad)), mode="reflect")
    w1_oihw = jnp.transpose(w1, (3, 2, 0, 1))
    w2_oihw = jnp.transpose(w2, (3, 2, 0, 1))
    y = lax.conv_general_dilated(xp, w1_oihw, (stride, stride), "VALID",
                                 dimension_numbers=("NCHW", "OIHW", "NCHW"))
    y = jax.nn.relu(y + b1[None, :, None, None])
    y = lax.conv_general_dilated(y, w2_oihw, (stride, stride), "VALID",
                                 dimension_numbers=("NCHW", "OIHW", "NCHW"))
    y = jax.nn.relu(y + b2[None, :, None, None])
    return y


if __name__ == "__main__":
    # Small shapes consistent with the module's forward.
    N, Cin, H, W = 2, 4, 16, 16
    Cout = 8
    kernel_size, stride = 3, 1
    Cmid = Cin // 2

    key = jax.random.PRNGKey(0)
    k_x, k_w1, k_b1, k_w2, k_b2 = jax.random.split(key, 5)

    x = jax.random.normal(k_x, (N, Cin, H, W), dtype=jnp.float32)
    w1 = 0.1 * jax.random.normal(k_w1, (kernel_size, kernel_size, Cin, Cmid),
                                 dtype=jnp.float32)
    b1 = 0.1 * jax.random.normal(k_b1, (Cmid,), dtype=jnp.float32)
    w2 = 0.1 * jax.random.normal(k_w2, (1, 1, Cmid, Cout), dtype=jnp.float32)
    b2 = 0.1 * jax.random.normal(k_b2, (Cout,), dtype=jnp.float32)

    out = dense_block_light(x, w1, b1, w2, b2,
                            kernel_size=kernel_size, stride=stride)
    out = jax.block_until_ready(out)

    ref = _reference(x, w1, b1, w2, b2, kernel_size=kernel_size, stride=stride)
    ref = jax.block_until_ready(ref)

    assert out.shape == ref.shape, (out.shape, ref.shape)
    assert jnp.allclose(out, ref, atol=1e-4, rtol=1e-4), \
        f"max abs err = {jnp.max(jnp.abs(out - ref))}"

    print("KERNEL_OK")
</pallas_src>

<mosaic_0001>
module attributes {stable_mosaic.version = 11 : i64} {
  func.func @_dense_block_kernel(%arg0: i32, %arg1: memref<8x256xf32, #tpu.memory_space<vmem>>, %arg2: memref<2x256xi32, #tpu.memory_space<vmem>>, %arg3: memref<72xf32, #tpu.memory_space<smem>>, %arg4: memref<2xf32, #tpu.memory_space<smem>>, %arg5: memref<8x2xf32, #tpu.memory_space<vmem>>, %arg6: memref<8x1xf32, #tpu.memory_space<vmem>>, %arg7: memref<16x256xf32, #tpu.memory_space<vmem>>) attributes {dimension_semantics = [#tpu.dimension_semantics<parallel>], iteration_bounds = array<i64: 1>, scalar_prefetch = 0 : i64, scratch_operands = 0 : i64, tpu.core_type = #tpu.core_type<tc>, window_params = [{transform_indices = @transform_0, window_bounds = array<i64: 8, 256>}, {pipeline_mode = #tpu.pipeline_mode<synchronous>, transform_indices = @transform_1, window_bounds = array<i64: 2, 256>}, {transform_indices = @transform_2, window_bounds = array<i64: 72>}, {transform_indices = @transform_3, window_bounds = array<i64: 2>}, {pipeline_mode = #tpu.pipeline_mode<synchronous>, transform_indices = @transform_4, window_bounds = array<i64: 8, 2>}, {pipeline_mode = #tpu.pipeline_mode<synchronous>, transform_indices = @transform_5, window_bounds = array<i64: 8, 1>}, {transform_indices = @transform_6, window_bounds = array<i64: 16, 256>}]} {
    %c0 = arith.constant 0 : index
    %c0_0 = arith.constant 0 : index
    %0 = vector.load %arg2[%c0, %c0_0] : memref<2x256xi32, #tpu.memory_space<vmem>>, vector<2x256xi32>
    %1 = vector.extract_strided_slice %0 {offsets = [0, 0], sizes = [1, 256], strides = [1, 1]} : vector<2x256xi32> to vector<1x256xi32>
    %2 = vector.extract_strided_slice %0 {offsets = [1, 0], sizes = [1, 256], strides = [1, 1]} : vector<2x256xi32> to vector<1x256xi32>
    %c-1_i32 = arith.constant -1 : i32
    %3 = vector.broadcast %c-1_i32 : i32 to vector<1x256xi32>
    %4 = arith.addi %1, %3 : vector<1x256xi32>
    %c0_i32 = arith.constant 0 : i32
    %5 = vector.broadcast %c0_i32 : i32 to vector<1x256xi32>
    %6 = arith.cmpi slt, %4, %5 : vector<1x256xi32>
    %c0_i32_1 = arith.constant 0 : i32
    %7 = vector.broadcast %c0_i32_1 : i32 to vector<1x256xi32>
    %8 = arith.subi %7, %4 : vector<1x256xi32>
    %9 = arith.select %6, %8, %4 : vector<1x256xi1>, vector<1x256xi32>
    %c16_i32 = arith.constant 16 : i32
    %10 = vector.broadcast %c16_i32 : i32 to vector<1x256xi32>
    %11 = arith.cmpi sge, %9, %10 : vector<1x256xi32>
    %c30_i32 = arith.constant 30 : i32
    %12 = vector.broadcast %c30_i32 : i32 to vector<1x256xi32>
    %13 = arith.subi %12, %9 : vector<1x256xi32>
    %14 = arith.select %11, %13, %9 : vector<1x256xi1>, vector<1x256xi32>
    %15 = arith.subi %14, %1 : vector<1x256xi32>
    %c16_i32_2 = arith.constant 16 : i32
    %16 = vector.broadcast %c16_i32_2 : i32 to vector<1x256xi32>
    %17 = arith.muli %15, %16 : vector<1x256xi32>
    %c0_i32_3 = arith.constant 0 : i32
    %18 = vector.broadcast %c0_i32_3 : i32 to vector<1x256xi32>
    %19 = arith.addi %1, %18 : vector<1x256xi32>
    %c0_i32_4 = arith.constant 0 : i32
    %20 = vector.broadcast %c0_i32_4 : i32 to vector<1x256xi32>
    %21 = arith.cmpi slt, %19, %20 : vector<1x256xi32>
    %c0_i32_5 = arith.constant 0 : i32
    %22 = vector.broadcast %c0_i32_5 : i32 to vector<1x256xi32>
    %23 = arith.subi %22, %19 : vector<1x256xi32>
    %24 = arith.select %21, %23, %19 : vector<1x256xi1>, vector<1x256xi32>
    %c16_i32_6 = arith.constant 16 : i32
    %25 = vector.broadcast %c16_i32_6 : i32 to vector<1x256xi32>
    %26 = arith.cmpi sge, %24, %25 : vector<1x256xi32>
    %c30_i32_7 = arith.constant 30 : i32
    %27 = vector.broadcast %c30_i32_7 : i32 to vector<1x256xi32>
    %28 = arith.subi %27, %24 : vector<1x256xi32>
    %29 = arith.select %26, %28, %24 : vector<1x256xi1>, vector<1x256xi32>
    %30 = arith.subi %29, %1 : vector<1x256xi32>
    %c16_i32_8 = arith.constant 16 : i32
    %31 = vector.broadcast %c16_i32_8 : i32 to vector<1x256xi32>
    %32 = arith.muli %30, %31 : vector<1x256xi32>
    %c1_i32 = arith.constant 1 : i32
    %33 = vector.broadcast %c1_i32 : i32 to vector<1x256xi32>
    %34 = arith.addi %1, %33 : vector<1x256xi32>
    %c0_i32_9 = arith.constant 0 : i32
    %35 = vector.broadcast %c0_i32_9 : i32 to vector<1x256xi32>
    %36 = arith.cmpi slt, %34, %35 : vector<1x256xi32>
    %c0_i32_10 = arith.constant 0 : i32
    %37 = vector.broadcast %c0_i32_10 : i32 to vector<1x256xi32>
    %38 = arith.subi %37, %34 : vector<1x256xi32>
    %39 = arith.select %36, %38, %34 : vector<1x256xi1>, vector<1x256xi32>
    %c16_i32_11 = arith.constant 16 : i32
    %40 = vector.broadcast %c16_i32_11 : i32 to vector<1x256xi32>
    %41 = arith.cmpi sge, %39, %40 : vector<1x256xi32>
    %c30_i32_12 = arith.constant 30 : i32
    %42 = vector.broadcast %c30_i32_12 : i32 to vector<1x256xi32>
    %43 = arith.subi %42, %39 : vector<1x256xi32>
    %44 = arith.select %41, %43, %39 : vector<1x256xi1>, vector<1x256xi32>
    %45 = arith.subi %44, %1 : vector<1x256xi32>
    %c16_i32_13 = arith.constant 16 : i32
    %46 = vector.broadcast %c16_i32_13 : i32 to vector<1x256xi32>
    %47 = arith.muli %45, %46 : vector<1x256xi32>
    %c-1_i32_14 = arith.constant -1 : i32
    %48 = vector.broadcast %c-1_i32_14 : i32 to vector<1x256xi32>
    %49 = arith.addi %2, %48 : vector<1x256xi32>
    %c0_i32_15 = arith.constant 0 : i32
    %50 = vector.broadcast %c0_i32_15 : i32 to vector<1x256xi32>
    %51 = arith.cmpi slt, %49, %50 : vector<1x256xi32>
    %c0_i32_16 = arith.constant 0 : i32
    %52 = vector.broadcast %c0_i32_16 : i32 to vector<1x256xi32>
    %53 = arith.subi %52, %49 : vector<1x256xi32>
    %54 = arith.select %51, %53, %49 : vector<1x256xi1>, vector<1x256xi32>
    %c16_i32_17 = arith.constant 16 : i32
    %55 = vector.broadcast %c16_i32_17 : i32 to vector<1x256xi32>
    %56 = arith.cmpi sge, %54, %55 : vector<1x256xi32>
    %c30_i32_18 = arith.constant 30 : i32
    %57 = vector.broadcast %c30_i32_18 : i32 to vector<1x256xi32>
    %58 = arith.subi %57, %54 : vector<1x256xi32>
    %59 = arith.select %56, %58, %54 : vector<1x256xi1>, vector<1x256xi32>
    %60 = arith.subi %59, %2 : vector<1x256xi32>
    %c0_i32_19 = arith.constant 0 : i32
    %61 = vector.broadcast %c0_i32_19 : i32 to vector<1x256xi32>
    %62 = arith.addi %2, %61 : vector<1x256xi32>
    %c0_i32_20 = arith.constant 0 : i32
    %63 = vector.broadcast %c0_i32_20 : i32 to vector<1x256xi32>
    %64 = arith.cmpi slt, %62, %63 : vector<1x256xi32>
    %c0_i32_21 = arith.constant 0 : i32
    %65 = vector.broadcast %c0_i32_21 : i32 to vector<1x256xi32>
    %66 = arith.subi %65, %62 : vector<1x256xi32>
    %67 = arith.select %64, %66, %62 : vector<1x256xi1>, vector<1x256xi32>
    %c16_i32_22 = arith.constant 16 : i32
    %68 = vector.broadcast %c16_i32_22 : i32 to vector<1x256xi32>
    %69 = arith.cmpi sge, %67, %68 : vector<1x256xi32>
    %c30_i32_23 = arith.constant 30 : i32
    %70 = vector.broadcast %c30_i32_23 : i32 to vector<1x256xi32>
    %71 = arith.subi %70, %67 : vector<1x256xi32>
    %72 = arith.select %69, %71, %67 : vector<1x256xi1>, vector<1x256xi32>
    %73 = arith.subi %72, %2 : vector<1x256xi32>
    %c1_i32_24 = arith.constant 1 : i32
    %74 = vector.broadcast %c1_i32_24 : i32 to vector<1x256xi32>
    %75 = arith.addi %2, %74 : vector<1x256xi32>
    %c0_i32_25 = arith.constant 0 : i32
    %76 = vector.broadcast %c0_i32_25 : i32 to vector<1x256xi32>
    %77 = arith.cmpi slt, %75, %76 : vector<1x256xi32>
    %c0_i32_26 = arith.constant 0 : i32
    %78 = vector.broadcast %c0_i32_26 : i32 to vector<1x256xi32>
    %79 = arith.subi %78, %75 : vector<1x256xi32>
    %80 = arith.select %77, %79, %75 : vector<1x256xi1>, vector<1x256xi32>
    %c16_i32_27 = arith.constant 16 : i32
    %81 = vector.broadcast %c16_i32_27 : i32 to vector<1x256xi32>
    %82 = arith.cmpi sge, %80, %81 : vector<1x256xi32>
    %c30_i32_28 = arith.constant 30 : i32
    %83 = vector.broadcast %c30_i32_28 : i32 to vector<1x256xi32>
    %84 = arith.subi %83, %80 : vector<1x256xi32>
    %85 = arith.select %82, %84, %80 : vector<1x256xi1>, vector<1x256xi32>
    %86 = arith.subi %85, %2 : vector<1x256xi32>
    %c0_29 = arith.constant 0 : index
    %c0_30 = arith.constant 0 : index
    %87 = vector.load %arg1[%c0_29, %c0_30] : memref<8x256xf32, #tpu.memory_space<vmem>>, vector<8x256xf32>
    %88 = vector.extract_strided_slice %87 {offsets = [0, 0], sizes = [1, 256], strides = [1, 1]} : vector<8x256xf32> to vector<1x256xf32>
    %89 = vector.extract_strided_slice %87 {offsets = [4, 0], sizes = [1, 256], strides = [1, 1]} : vector<8x256xf32> to vector<1x256xf32>
    %90 = vector.extract_strided_slice %87 {offsets = [1, 0], sizes = [1, 256], strides = [1, 1]} : vector<8x256xf32> to vector<1x256xf32>
    %91 = vector.extract_strided_slice %87 {offsets = [5, 0], sizes = [1, 256], strides = [1, 1]} : vector<8x256xf32> to vector<1x256xf32>
    %92 = vector.extract_strided_slice %87 {offsets = [2, 0], sizes = [1, 256], strides = [1, 1]} : vector<8x256xf32> to vector<1x256xf32>
    %93 = vector.extract_strided_slice %87 {offsets = [6, 0], sizes = [1, 256], strides = [1, 1]} : vector<8x256xf32> to vector<1x256xf32>
    %94 = vector.extract_strided_slice %87 {offsets = [3, 0], sizes = [1, 256], strides = [1, 1]} : vector<8x256xf32> to vector<1x256xf32>
    %95 = vector.extract_strided_slice %87 {offsets = [7, 0], sizes = [1, 256], strides = [1, 1]} : vector<8x256xf32> to vector<1x256xf32>
    %96 = tpu.concatenate %88, %89, %90, %91, %92, %93, %94, %95 in 0 : vector<1x256xf32>, vector<1x256xf32>, vector<1x256xf32>, vector<1x256xf32>, vector<1x256xf32>, vector<1x256xf32>, vector<1x256xf32>, vector<1x256xf32> -> vector<8x256xf32>
    %c0_31 = arith.constant 0 : index
    %97 = memref.load %arg4[%c0_31] : memref<2xf32, #tpu.memory_space<smem>>
    %98 = vector.broadcast %97 : f32 to vector<2x256xf32>
    %c1 = arith.constant 1 : index
    %99 = memref.load %arg4[%c1] : memref<2xf32, #tpu.memory_space<smem>>
    %100 = vector.broadcast %99 : f32 to vector<2x256xf32>
    %101 = arith.addi %17, %60 : vector<1x256xi32>
    %102 = vector.extract_strided_slice %96 {offsets = [0, 239], sizes = [8, 17], strides = [1, 1]} : vector<8x256xf32> to vector<8x17xf32>
    %103 = vector.extract_strided_slice %96 {offsets = [0, 0], sizes = [8, 239], strides = [1, 1]} : vector<8x256xf32> to vector<8x239xf32>
    %104 = tpu.concatenate %102, %103 in 1 : vector<8x17xf32>, vector<8x239xf32> -> vector<8x256xf32>
    %c-15_i32 = arith.constant -15 : i32
    %105 = vector.broadcast %c-15_i32 : i32 to vector<1x256xi32>
    %106 = arith.cmpi eq, %101, %105 : vector<1x256xi32>
    %107 = vector.extract_strided_slice %96 {offsets = [0, 241], sizes = [8, 15], strides = [1, 1]} : vector<8x256xf32> to vector<8x15xf32>
    %108 = vector.extract_strided_slice %96 {offsets = [0, 0], sizes = [8, 241], strides = [1, 1]} : vector<8x256xf32> to vector<8x241xf32>
    %109 = tpu.concatenate %107, %108 in 1 : vector<8x15xf32>, vector<8x241xf32> -> vector<8x256xf32>
    %110 = vector.shape_cast %106 : vector<1x256xi1> to vector<1x256xi1>
    %111 = vector.broadcast %110 : vector<1x256xi1> to vector<8x256xi1>
    %112 = arith.select %111, %109, %104 : vector<8x256xi1>, vector<8x256xf32>
    %c15_i32 = arith.constant 15 : i32
    %113 = vector.broadcast %c15_i32 : i32 to vector<1x256xi32>
    %114 = arith.cmpi eq, %101, %113 : vector<1x256xi32>
    %115 = vector.extract_strided_slice %96 {offsets = [0, 15], sizes = [8, 241], strides = [1, 1]} : vector<8x256xf32> to vector<8x241xf32>
    %116 = vector.extract_strided_slice %96 {offsets = [0, 0], sizes = [8, 15], strides = [1, 1]} : vector<8x256xf32> to vector<8x15xf32>
    %117 = tpu.concatenate %115, %116 in 1 : vector<8x241xf32>, vector<8x15xf32> -> vector<8x256xf32>
    %118 = vector.shape_cast %114 : vector<1x256xi1> to vector<1x256xi1>
    %119 = vector.broadcast %118 : vector<1x256xi1> to vector<8x256xi1>
    %120 = arith.select %119, %117, %112 : vector<8x256xi1>, vector<8x256xf32>
    %c17_i32 = arith.constant 17 : i32
    %121 = vector.broadcast %c17_i32 : i32 to vector<1x256xi32>
    %122 = arith.cmpi eq, %101, %121 : vector<1x256xi32>
    %123 = vector.extract_strided_slice %96 {offsets = [0, 17], sizes = [8, 239], strides = [1, 1]} : vector<8x256xf32> to vector<8x239xf32>
    %124 = vector.extract_strided_slice %96 {offsets = [0, 0], sizes = [8, 17], strides = [1, 1]} : vector<8x256xf32> to vector<8x17xf32>
    %125 = tpu.concatenate %123, %124 in 1 : vector<8x239xf32>, vector<8x17xf32> -> vector<8x256xf32>
    %126 = vector.shape_cast %122 : vector<1x256xi1> to vector<1x256xi1>
    %127 = vector.broadcast %126 : vector<1x256xi1> to vector<8x256xi1>
    %128 = arith.select %127, %125, %120 : vector<8x256xi1>, vector<8x256xf32>
    %129 = vector.extract_strided_slice %128 {offsets = [0, 0], sizes = [2, 256], strides = [1, 1]} : vector<8x256xf32> to vector<2x256xf32>
    %c0_32 = arith.constant 0 : index
    %130 = memref.load %arg3[%c0_32] : memref<72xf32, #tpu.memory_space<smem>>
    %131 = vector.broadcast %130 : f32 to vector<2x256xf32>
    %132 = arith.mulf %131, %129 : vector<2x256xf32>
    %133 = arith.addf %98, %132 : vector<2x256xf32>
    %c1_33 = arith.constant 1 : index
    %134 = memref.load %arg3[%c1_33] : memref<72xf32, #tpu.memory_space<smem>>
    %135 = vector.broadcast %134 : f32 to vector<2x256xf32>
    %136 = arith.mulf %135, %129 : vector<2x256xf32>
    %137 = arith.addf %100, %136 : vector<2x256xf32>
    %138 = vector.extract_strided_slice %128 {offsets = [2, 0], sizes = [2, 256], strides = [1, 1]} : vector<8x256xf32> to vector<2x256xf32>
    %c2 = arith.constant 2 : index
    %139 = memref.load %arg3[%c2] : memref<72xf32, #tpu.memory_space<smem>>
    %140 = vector.broadcast %139 : f32 to vector<2x256xf32>
    %141 = arith.mulf %140, %138 : vector<2x256xf32>
    %142 = arith.addf %133, %141 : vector<2x256xf32>
    %c3 = arith.constant 3 : index
    %143 = memref.load %arg3[%c3] : memref<72xf32, #tpu.memory_space<smem>>
    %144 = vector.broadcast %143 : f32 to vector<2x256xf32>
    %145 = arith.mulf %144, %138 : vector<2x256xf32>
    %146 = arith.addf %137, %145 : vector<2x256xf32>
    %147 = vector.extract_strided_slice %128 {offsets = [4, 0], sizes = [2, 256], strides = [1, 1]} : vector<8x256xf32> to vector<2x256xf32>
    %c4 = arith.constant 4 : index
    %148 = memref.load %arg3[%c4] : memref<72xf32, #tpu.memory_space<smem>>
    %149 = vector.broadcast %148 : f32 to vector<2x256xf32>
    %150 = arith.mulf %149, %147 : vector<2x256xf32>
    %151 = arith.addf %142, %150 : vector<2x256xf32>
    %c5 = arith.constant 5 : index
    %152 = memref.load %arg3[%c5] : memref<72xf32, #tpu.memory_space<smem>>
    %153 = vector.broadcast %152 : f32 to vector<2x256xf32>
    %154 = arith.mulf %153, %147 : vector<2x256xf32>
    %155 = arith.addf %146, %154 : vector<2x256xf32>
    %156 = vector.extract_strided_slice %128 {offsets = [6, 0], sizes = [2, 256], strides = [1, 1]} : vector<8x256xf32> to vector<2x256xf32>
    %c6 = arith.constant 6 : index
    %157 = memref.load %arg3[%c6] : memref<72xf32, #tpu.memory_space<smem>>
    %158 = vector.broadcast %157 : f32 to vector<2x256xf32>
    %159 = arith.mulf %158, %156 : vector<2x256xf32>
    %160 = arith.addf %151, %159 : vector<2x256xf32>
    %c7 = arith.constant 7 : index
    %161 = memref.load %arg3[%c7] : memref<72xf32, #tpu.memory_space<smem>>
    %162 = vector.broadcast %161 : f32 to vector<2x256xf32>
    %163 = arith.mulf %162, %156 : vector<2x256xf32>
    %164 = arith.addf %155, %163 : vector<2x256xf32>
    %165 = arith.addi %17, %73 : vector<1x256xi32>
    %166 = vector.extract_strided_slice %96 {offsets = [0, 240], sizes = [8, 16], strides = [1, 1]} : vector<8x256xf32> to vector<8x16xf32>
    %167 = vector.extract_strided_slice %96 {offsets = [0, 0], sizes = [8, 240], strides = [1, 1]} : vector<8x256xf32> to vector<8x240xf32>
    %168 = tpu.concatenate %166, %167 in 1 : vector<8x16xf32>, vector<8x240xf32> -> vector<8x256xf32>
    %c16_i32_34 = arith.constant 16 : i32
    %169 = vector.broadcast %c16_i32_34 : i32 to vector<1x256xi32>
    %170 = arith.cmpi eq, %165, %169 : vector<1x256xi32>
    %171 = vector.extract_strided_slice %96 {offsets = [0, 16], sizes = [8, 240], strides = [1, 1]} : vector<8x256xf32> to vector<8x240xf32>
    %172 = vector.extract_strided_slice %96 {offsets = [0, 0], sizes = [8, 16], strides = [1, 1]} : vector<8x256xf32> to vector<8x16xf32>
    %173 = tpu.concatenate %171, %172 in 1 : vector<8x240xf32>, vector<8x16xf32> -> vector<8x256xf32>
    %174 = vector.shape_cast %170 : vector<1x256xi1> to vector<1x256xi1>
    %175 = vector.broadcast %174 : vector<1x256xi1> to vector<8x256xi1>
    %176 = arith.select %175, %173, %168 : vector<8x256xi1>, vector<8x256xf32>
    %177 = vector.extract_strided_slice %176 {offsets = [0, 0], sizes = [2, 256], strides = [1, 1]} : vector<8x256xf32> to vector<2x256xf32>
    %c8 = arith.constant 8 : index
    %178 = memref.load %arg3[%c8] : memref<72xf32, #tpu.memory_space<smem>>
    %179 = vector.broadcast %178 : f32 to vector<2x256xf32>
    %180 = arith.mulf %179, %177 : vector<2x256xf32>
    %181 = arith.addf %160, %180 : vector<2x256xf32>
    %c9 = arith.constant 9 : index
    %182 = memref.load %arg3[%c9] : memref<72xf32, #tpu.memory_space<smem>>
    %183 = vector.broadcast %182 : f32 to vector<2x256xf32>
    %184 = arith.mulf %183, %177 : vector<2x256xf32>
    %185 = arith.addf %164, %184 : vector<2x256xf32>
    %186 = vector.extract_strided_slice %176 {offsets = [2, 0], sizes = [2, 256], strides = [1, 1]} : vector<8x256xf32> to vector<2x256xf32>
    %c10 = arith.constant 10 : index
    %187 = memref.load %arg3[%c10] : memref<72xf32, #tpu.memory_space<smem>>
    %188 = vector.broadcast %187 : f32 to vector<2x256xf32>
    %189 = arith.mulf %188, %186 : vector<2x256xf32>
    %190 = arith.addf %181, %189 : vector<2x256xf32>
    %c11 = arith.constant 11 : index
    %191 = memref.load %arg3[%c11] : memref<72xf32, #tpu.memory_space<smem>>
    %192 = vector.broadcast %191 : f32 to vector<2x256xf32>
    %193 = arith.mulf %192, %186 : vector<2x256xf32>
    %194 = arith.addf %185, %193 : vector<2x256xf32>
    %195 = vector.extract_strided_slice %176 {offsets = [4, 0], sizes = [2, 256], strides = [1, 1]} : vector<8x256xf32> to vector<2x256xf32>
    %c12 = arith.constant 12 : index
    %196 = memref.load %arg3[%c12] : memref<72xf32, #tpu.memory_space<smem>>
    %197 = vector.broadcast %196 : f32 to vector<2x256xf32>
    %198 = arith.mulf %197, %195 : vector<2x256xf32>
    %199 = arith.addf %190, %198 : vector<2x256xf32>
    %c13 = arith.constant 13 : index
    %200 = memref.load %arg3[%c13] : memref<72xf32, #tpu.memory_space<smem>>
    %201 = vector.broadcast %200 : f32 to vector<2x256xf32>
    %202 = arith.mulf %201, %195 : vector<2x256xf32>
    %203 = arith.addf %194, %202 : vector<2x256xf32>
    %204 = vector.extract_strided_slice %176 {offsets = [6, 0], sizes = [2, 256], strides = [1, 1]} : vector<8x256xf32> to vector<2x256xf32>
    %c14 = arith.constant 14 : index
    %205 = memref.load %arg3[%c14] : memref<72xf32, #tpu.memory_space<smem>>
    %206 = vector.broadcast %205 : f32 to vector<2x256xf32>
    %207 = arith.mulf %206, %204 : vector<2x256xf32>
    %208 = arith.addf %199, %207 : vector<2x256xf32>
    %c15 = arith.constant 15 : index
    %209 = memref.load %arg3[%c15] : memref<72xf32, #tpu.memory_space<smem>>
    %210 = vector.broadcast %209 : f32 to vector<2x256xf32>
    %211 = arith.mulf %210, %204 : vector<2x256xf32>
    %212 = arith.addf %203, %211 : vector<2x256xf32>
    %213 = arith.addi %17, %86 : vector<1x256xi32>
    %c-17_i32 = arith.constant -17 : i32
    %214 = vector.broadcast %c-17_i32 : i32 to vector<1x256xi32>
    %215 = arith.cmpi eq, %213, %214 : vector<1x256xi32>
    %216 = vector.shape_cast %215 : vector<1x256xi1> to vector<1x256xi1>
    %217 = vector.broadcast %216 : vector<1x256xi1> to vector<8x256xi1>
    %218 = arith.select %217, %104, %109 : vector<8x256xi1>, vector<8x256xf32>
    %c15_i32_35 = arith.constant 15 : i32
    %219 = vector.broadcast %c15_i32_35 : i32 to vector<1x256xi32>
    %220 = arith.cmpi eq, %213, %219 : vector<1x256xi32>
    %221 = vector.shape_cast %220 : vector<1x256xi1> to vector<1x256xi1>
    %222 = vector.broadcast %221 : vector<1x256xi1> to vector<8x256xi1>
    %223 = arith.select %222, %117, %218 : vector<8x256xi1>, vector<8x256xf32>
    %c17_i32_36 = arith.constant 17 : i32
    %224 = vector.broadcast %c17_i32_36 : i32 to vector<1x256xi32>
    %225 = arith.cmpi eq, %213, %224 : vector<1x256xi32>
    %226 = vector.shape_cast %225 : vector<1x256xi1> to vector<1x256xi1>
    %227 = vector.broadcast %226 : vector<1x256xi1> to vector<8x256xi1>
    %228 = arith.select %227, %125, %223 : vector<8x256xi1>, vector<8x256xf32>
    %229 = vector.extract_strided_slice %228 {offsets = [0, 0], sizes = [2, 256], strides = [1, 1]} : vector<8x256xf32> to vector<2x256xf32>
    %c16 = arith.constant 16 : index
    %230 = memref.load %arg3[%c16] : memref<72xf32, #tpu.memory_space<smem>>
    %231 = vector.broadcast %230 : f32 to vector<2x256xf32>
    %232 = arith.mulf %231, %229 : vector<2x256xf32>
    %233 = arith.addf %208, %232 : vector<2x256xf32>
    %c17 = arith.constant 17 : index
    %234 = memref.load %arg3[%c17] : memref<72xf32, #tpu.memory_space<smem>>
    %235 = vector.broadcast %234 : f32 to vector<2x256xf32>
    %236 = arith.mulf %235, %229 : vector<2x256xf32>
    %237 = arith.addf %212, %236 : vector<2x256xf32>
    %238 = vector.extract_strided_slice %228 {offsets = [2, 0], sizes = [2, 256], strides = [1, 1]} : vector<8x256xf32> to vector<2x256xf32>
    %c18 = arith.constant 18 : index
    %239 = memref.load %arg3[%c18] : memref<72xf32, #tpu.memory_space<smem>>
    %240 = vector.broadcast %239 : f32 to vector<2x256xf32>
    %241 = arith.mulf %240, %238 : vector<2x256xf32>
    %242 = arith.addf %233, %241 : vector<2x256xf32>
    %c19 = arith.constant 19 : index
    %243 = memref.load %arg3[%c19] : memref<72xf32, #tpu.memory_space<smem>>
    %244 = vector.broadcast %243 : f32 to vector<2x256xf32>
    %245 = arith.mulf %244, %238 : vector<2x256xf32>
    %246 = arith.addf %237, %245 : vector<2x256xf32>
    %247 = vector.extract_strided_slice %228 {offsets = [4, 0], sizes = [2, 256], strides = [1, 1]} : vector<8x256xf32> to vector<2x256xf32>
    %c20 = arith.constant 20 : index
    %248 = memref.load %arg3[%c20] : memref<72xf32, #tpu.memory_space<smem>>
    %249 = vector.broadcast %248 : f32 to vector<2x256xf32>
    %250 = arith.mulf %249, %247 : vector<2x256xf32>
    %251 = arith.addf %242, %250 : vector<2x256xf32>
    %c21 = arith.constant 21 : index
    %252 = memref.load %arg3[%c21] : memref<72xf32, #tpu.memory_space<smem>>
    %253 = vector.broadcast %252 : f32 to vector<2x256xf32>
    %254 = arith.mulf %253, %247 : vector<2x256xf32>
    %255 = arith.addf %246, %254 : vector<2x256xf32>
    %256 = vector.extract_strided_slice %228 {offsets = [6, 0], sizes = [2, 256], strides = [1, 1]} : vector<8x256xf32> to vector<2x256xf32>
    %c22 = arith.constant 22 : index
    %257 = memref.load %arg3[%c22] : memref<72xf32, #tpu.memory_space<smem>>
    %258 = vector.broadcast %257 : f32 to vector<2x256xf32>
    %259 = arith.mulf %258, %256 : vector<2x256xf32>
    %260 = arith.addf %251, %259 : vector<2x256xf32>
    %c23 = arith.constant 23 : index
    %261 = memref.load %arg3[%c23] : memref<72xf32, #tpu.memory_space<smem>>
    %262 = vector.broadcast %261 : f32 to vector<2x256xf32>
    %263 = arith.mulf %262, %256 : vector<2x256xf32>
    %264 = arith.addf %255, %263 : vector<2x256xf32>
    %265 = arith.addi %32, %60 : vector<1x256xi32>
    %266 = vector.extract_strided_slice %96 {offsets = [0, 255], sizes = [8, 1], strides = [1, 1]} : vector<8x256xf32> to vector<8x1xf32>
    %267 = vector.extract_strided_slice %96 {offsets = [0, 0], sizes = [8, 255], strides = [1, 1]} : vector<8x256xf32> to vector<8x255xf32>
    %268 = tpu.concatenate %266, %267 in 1 : vector<8x1xf32>, vector<8x255xf32> -> vector<8x256xf32>
    %c1_i32_37 = arith.constant 1 : i32
    %269 = vector.broadcast %c1_i32_37 : i32 to vector<1x256xi32>
    %270 = arith.cmpi eq, %265, %269 : vector<1x256xi32>
    %271 = vector.extract_strided_slice %96 {offsets = [0, 1], sizes = [8, 255], strides = [1, 1]} : vector<8x256xf32> to vector<8x255xf32>
    %272 = vector.extract_strided_slice %96 {offsets = [0, 0], sizes = [8, 1], strides = [1, 1]} : vector<8x256xf32> to vector<8x1xf32>
    %273 = tpu.concatenate %271, %272 in 1 : vector<8x255xf32>, vector<8x1xf32> -> vector<8x256xf32>
    %274 = vector.shape_cast %270 : vector<1x256xi1> to vector<1x256xi1>
    %275 = vector.broadcast %274 : vector<1x256xi1> to vector<8x256xi1>
    %276 = arith.select %275, %273, %268 : vector<8x256xi1>, vector<8x256xf32>
    %277 = vector.extract_strided_slice %276 {offsets = [0, 0], sizes = [2, 256], strides = [1, 1]} : vector<8x256xf32> to vector<2x256xf32>
    %c24 = arith.constant 24 : index
    %278 = memref.load %arg3[%c24] : memref<72xf32, #tpu.memory_space<smem>>
    %279 = vector.broadcast %278 : f32 to vector<2x256xf32>
    %280 = arith.mulf %279, %277 : vector<2x256xf32>
    %281 = arith.addf %260, %280 : vector<2x256xf32>
    %c25 = arith.constant 25 : index
    %282 = memref.load %arg3[%c25] : memref<72xf32, #tpu.memory_space<smem>>
    %283 = vector.broadcast %282 : f32 to vector<2x256xf32>
    %284 = arith.mulf %283, %277 : vector<2x256xf32>
    %285 = arith.addf %264, %284 : vector<2x256xf32>
    %286 = vector.extract_strided_slice %276 {offsets = [2, 0], sizes = [2, 256], strides = [1, 1]} : vector<8x256xf32> to vector<2x256xf32>
    %c26 = arith.constant 26 : index
    %287 = memref.load %arg3[%c26] : memref<72xf32, #tpu.memory_space<smem>>
    %288 = vector.broadcast %287 : f32 to vector<2x256xf32>
    %289 = arith.mulf %288, %286 : vector<2x256xf32>
    %290 = arith.addf %281, %289 : vector<2x256xf32>
    %c27 = arith.constant 27 : index
    %291 = memref.load %arg3[%c27] : memref<72xf32, #tpu.memory_space<smem>>
    %292 = vector.broadcast %291 : f32 to vector<2x256xf32>
    %293 = arith.mulf %292, %286 : vector<2x256xf32>
    %294 = arith.addf %285, %293 : vector<2x256xf32>
    %295 = vector.extract_strided_slice %276 {offsets = [4, 0], sizes = [2, 256], strides = [1, 1]} : vector<8x256xf32> to vector<2x256xf32>
    %c28 = arith.constant 28 : index
    %296 = memref.load %arg3[%c28] : memref<72xf32, #tpu.memory_space<smem>>
    %297 = vector.broadcast %296 : f32 to vector<2x256xf32>
    %298 = arith.mulf %297, %295 : vector<2x256xf32>
    %299 = arith.addf %290, %298 : vector<2x256xf32>
    %c29 = arith.constant 29 : index
    %300 = memref.load %arg3[%c29] : memref<72xf32, #tpu.memory_space<smem>>
    %301 = vector.broadcast %300 : f32 to vector<2x256xf32>
    %302 = arith.mulf %301, %295 : vector<2x256xf32>
    %303 = arith.addf %294, %302 : vector<2x256xf32>
    %304 = vector.extract_strided_slice %276 {offsets = [6, 0], sizes = [2, 256], strides = [1, 1]} : vector<8x256xf32> to vector<2x256xf32>
    %c30 = arith.constant 30 : index
    %305 = memref.load %arg3[%c30] : memref<72xf32, #tpu.memory_space<smem>>
    %306 = vector.broadcast %305 : f32 to vector<2x256xf32>
    %307 = arith.mulf %306, %304 : vector<2x256xf32>
    %308 = arith.addf %299, %307 : vector<2x256xf32>
    %c31 = arith.constant 31 : index
    %309 = memref.load %arg3[%c31] : memref<72xf32, #tpu.memory_space<smem>>
    %310 = vector.broadcast %309 : f32 to vector<2x256xf32>
    %311 = arith.mulf %310, %304 : vector<2x256xf32>
    %312 = arith.addf %303, %311 : vector<2x256xf32>
    %313 = vector.extract_strided_slice %96 {offsets = [0, 0], sizes = [2, 256], strides = [1, 1]} : vector<8x256xf32> to vector<2x256xf32>
    %c32 = arith.constant 32 : index
    %314 = memref.load %arg3[%c32] : memref<72xf32, #tpu.memory_space<smem>>
    %315 = vector.broadcast %314 : f32 to vector<2x256xf32>
    %316 = arith.mulf %315, %313 : vector<2x256xf32>
    %317 = arith.addf %308, %316 : vector<2x256xf32>
    %c33 = arith.constant 33 : index
    %318 = memref.load %arg3[%c33] : memref<72xf32, #tpu.memory_space<smem>>
    %319 = vector.broadcast %318 : f32 to vector<2x256xf32>
    %320 = arith.mulf %319, %313 : vector<2x256xf32>
    %321 = arith.addf %312, %320 : vector<2x256xf32>
    %322 = vector.extract_strided_slice %96 {offsets = [2, 0], sizes = [2, 256], strides = [1, 1]} : vector<8x256xf32> to vector<2x256xf32>
    %c34 = arith.constant 34 : index
    %323 = memref.load %arg3[%c34] : memref<72xf32, #tpu.memory_space<smem>>
    %324 = vector.broadcast %323 : f32 to vector<2x256xf32>
    %325 = arith.mulf %324, %322 : vector<2x256xf32>
    %326 = arith.addf %317, %325 : vector<2x256xf32>
    %c35 = arith.constant 35 : index
    %327 = memref.load %arg3[%c35] : memref<72xf32, #tpu.memory_space<smem>>
    %328 = vector.broadcast %327 : f32 to vector<2x256xf32>
    %329 = arith.mulf %328, %322 : vector<2x256xf32>
    %330 = arith.addf %321, %329 : vector<2x256xf32>
    %331 = vector.extract_strided_slice %96 {offsets = [4, 0], sizes = [2, 256], strides = [1, 1]} : vector<8x256xf32> to vector<2x256xf32>
    %c36 = arith.constant 36 : index
    %332 = memref.load %arg3[%c36] : memref<72xf32, #tpu.memory_space<smem>>
    %333 = vector.broadcast %332 : f32 to vector<2x256xf32>
    %334 = arith.mulf %333, %331 : vector<2x256xf32>
    %335 = arith.addf %326, %334 : vector<2x256xf32>
    %c37 = arith.constant 37 : index
    %336 = memref.load %arg3[%c37] : memref<72xf32, #tpu.memory_space<smem>>
    %337 = vector.broadcast %336 : f32 to vector<2x256xf32>
    %338 = arith.mulf %337, %331 : vector<2x256xf32>
    %339 = arith.addf %330, %338 : vector<2x256xf32>
    %340 = vector.extract_strided_slice %96 {offsets = [6, 0], sizes = [2, 256], strides = [1, 1]} : vector<8x256xf32> to vector<2x256xf32>
    %c38 = arith.constant 38 : index
    %341 = memref.load %arg3[%c38] : memref<72xf32, #tpu.memory_space<smem>>
    %342 = vector.broadcast %341 : f32 to vector<2x256xf32>
    %343 = arith.mulf %342, %340 : vector<2x256xf32>
    %344 = arith.addf %335, %343 : vector<2x256xf32>
    %c39 = arith.constant 39 : index
    %345 = memref.load %arg3[%c39] : memref<72xf32, #tpu.memory_space<smem>>
    %346 = vector.broadcast %345 : f32 to vector<2x256xf32>
    %347 = arith.mulf %346, %340 : vector<2x256xf32>
    %348 = arith.addf %339, %347 : vector<2x256xf32>
    %349 = arith.addi %32, %86 : vector<1x256xi32>
    %c-1_i32_38 = arith.constant -1 : i32
    %350 = vector.broadcast %c-1_i32_38 : i32 to vector<1x256xi32>
    %351 = arith.cmpi eq, %349, %350 : vector<1x256xi32>
    %352 = vector.shape_cast %351 : vector<1x256xi1> to vector<1x256xi1>
    %353 = vector.broadcast %352 : vector<1x256xi1> to vector<8x256xi1>
    %354 = arith.select %353, %268, %273 : vector<8x256xi1>, vector<8x256xf32>
    %355 = vector.extract_strided_slice %354 {offsets = [0, 0], sizes = [2, 256], strides = [1, 1]} : vector<8x256xf32> to vector<2x256xf32>
    %c40 = arith.constant 40 : index
    %356 = memref.load %arg3[%c40] : memref<72xf32, #tpu.memory_space<smem>>
    %357 = vector.broadcast %356 : f32 to vector<2x256xf32>
    %358 = arith.mulf %357, %355 : vector<2x256xf32>
    %359 = arith.addf %344, %358 : vector<2x256xf32>
    %c41 = arith.constant 41 : index
    %360 = memref.load %arg3[%c41] : memref<72xf32, #tpu.memory_space<smem>>
    %361 = vector.broadcast %360 : f32 to vector<2x256xf32>
    %362 = arith.mulf %361, %355 : vector<2x256xf32>
    %363 = arith.addf %348, %362 : vector<2x256xf32>
    %364 = vector.extract_strided_slice %354 {offsets = [2, 0], sizes = [2, 256], strides = [1, 1]} : vector<8x256xf32> to vector<2x256xf32>
    %c42 = arith.constant 42 : index
    %365 = memref.load %arg3[%c42] : memref<72xf32, #tpu.memory_space<smem>>
    %366 = vector.broadcast %365 : f32 to vector<2x256xf32>
    %367 = arith.mulf %366, %364 : vector<2x256xf32>
    %368 = arith.addf %359, %367 : vector<2x256xf32>
    %c43 = arith.constant 43 : index
    %369 = memref.load %arg3[%c43] : memref<72xf32, #tpu.memory_space<smem>>
    %370 = vector.broadcast %369 : f32 to vector<2x256xf32>
    %371 = arith.mulf %370, %364 : vector<2x256xf32>
    %372 = arith.addf %363, %371 : vector<2x256xf32>
    %373 = vector.extract_strided_slice %354 {offsets = [4, 0], sizes = [2, 256], strides = [1, 1]} : vector<8x256xf32> to vector<2x256xf32>
    %c44 = arith.constant 44 : index
    %374 = memref.load %arg3[%c44] : memref<72xf32, #tpu.memory_space<smem>>
    %375 = vector.broadcast %374 : f32 to vector<2x256xf32>
    %376 = arith.mulf %375, %373 : vector<2x256xf32>
    %377 = arith.addf %368, %376 : vector<2x256xf32>
    %c45 = arith.constant 45 : index
    %378 = memref.load %arg3[%c45] : memref<72xf32, #tpu.memory_space<smem>>
    %379 = vector.broadcast %378 : f32 to vector<2x256xf32>
    %380 = arith.mulf %379, %373 : vector<2x256xf32>
    %381 = arith.addf %372, %380 : vector<2x256xf32>
    %382 = vector.extract_strided_slice %354 {offsets = [6, 0], sizes = [2, 256], strides = [1, 1]} : vector<8x256xf32> to vector<2x256xf32>
    %c46 = arith.constant 46 : index
    %383 = memref.load %arg3[%c46] : memref<72xf32, #tpu.memory_space<smem>>
    %384 = vector.broadcast %383 : f32 to vector<2x256xf32>
    %385 = arith.mulf %384, %382 : vector<2x256xf32>
    %386 = arith.addf %377, %385 : vector<2x256xf32>
    %c47 = arith.constant 47 : index
    %387 = memref.load %arg3[%c47] : memref<72xf32, #tpu.memory_space<smem>>
    %388 = vector.broadcast %387 : f32 to vector<2x256xf32>
    %389 = arith.mulf %388, %382 : vector<2x256xf32>
    %390 = arith.addf %381, %389 : vector<2x256xf32>
    %391 = arith.addi %47, %60 : vector<1x256xi32>
    %c-17_i32_39 = arith.constant -17 : i32
    %392 = vector.broadcast %c-17_i32_39 : i32 to vector<1x256xi32>
    %393 = arith.cmpi eq, %391, %392 : vector<1x256xi32>
    %394 = vector.shape_cast %393 : vector<1x256xi1> to vector<1x256xi1>
    %395 = vector.broadcast %394 : vector<1x256xi1> to vector<8x256xi1>
    %396 = arith.select %395, %104, %117 : vector<8x256xi1>, vector<8x256xf32>
    %c-15_i32_40 = arith.constant -15 : i32
    %397 = vector.broadcast %c-15_i32_40 : i32 to vector<1x256xi32>
    %398 = arith.cmpi eq, %391, %397 : vector<1x256xi32>
    %399 = vector.shape_cast %398 : vector<1x256xi1> to vector<1x256xi1>
    %400 = vector.broadcast %399 : vector<1x256xi1> to vector<8x256xi1>
    %401 = arith.select %400, %109, %396 : vector<8x256xi1>, vector<8x256xf32>
    %c17_i32_41 = arith.constant 17 : i32
    %402 = vector.broadcast %c17_i32_41 : i32 to vector<1x256xi32>
    %403 = arith.cmpi eq, %391, %402 : vector<1x256xi32>
    %404 = vector.shape_cast %403 : vector<1x256xi1> to vector<1x256xi1>
    %405 = vector.broadcast %404 : vector<1x256xi1> to vector<8x256xi1>
    %406 = arith.select %405, %125, %401 : vector<8x256xi1>, vector<8x256xf32>
    %407 = vector.extract_strided_slice %406 {offsets = [0, 0], sizes = [2, 256], strides = [1, 1]} : vector<8x256xf32> to vector<2x256xf32>
    %c48 = arith.constant 48 : index
    %408 = memref.load %arg3[%c48] : memref<72xf32, #tpu.memory_space<smem>>
    %409 = vector.broadcast %408 : f32 to vector<2x256xf32>
    %410 = arith.mulf %409, %407 : vector<2x256xf32>
    %411 = arith.addf %386, %410 : vector<2x256xf32>
    %c49 = arith.constant 49 : index
    %412 = memref.load %arg3[%c49] : memref<72xf32, #tpu.memory_space<smem>>
    %413 = vector.broadcast %412 : f32 to vector<2x256xf32>
    %414 = arith.mulf %413, %407 : vector<2x256xf32>
    %415 = arith.addf %390, %414 : vector<2x256xf32>
    %416 = vector.extract_strided_slice %406 {offsets = [2, 0], sizes = [2, 256], strides = [1, 1]} : vector<8x256xf32> to vector<2x256xf32>
    %c50 = arith.constant 50 : index
    %417 = memref.load %arg3[%c50] : memref<72xf32, #tpu.memory_space<smem>>
    %418 = vector.broadcast %417 : f32 to vector<2x256xf32>
    %419 = arith.mulf %418, %416 : vector<2x256xf32>
    %420 = arith.addf %411, %419 : vector<2x256xf32>
    %c51 = arith.constant 51 : index
    %421 = memref.load %arg3[%c51] : memref<72xf32, #tpu.memory_space<smem>>
    %422 = vector.broadcast %421 : f32 to vector<2x256xf32>
    %423 = arith.mulf %422, %416 : vector<2x256xf32>
    %424 = arith.addf %415, %423 : vector<2x256xf32>
    %425 = vector.extract_strided_slice %406 {offsets = [4, 0], sizes = [2, 256], strides = [1, 1]} : vector<8x256xf32> to vector<2x256xf32>
    %c52 = arith.constant 52 : index
    %426 = memref.load %arg3[%c52] : memref<72xf32, #tpu.memory_space<smem>>
    %427 = vector.broadcast %426 : f32 to vector<2x256xf32>
    %428 = arith.mulf %427, %425 : vector<2x256xf32>
    %429 = arith.addf %420, %428 : vector<2x256xf32>
    %c53 = arith.constant 53 : index
    %430 = memref.load %arg3[%c53] : memref<72xf32, #tpu.memory_space<smem>>
    %431 = vector.broadcast %430 : f32 to vector<2x256xf32>
    %432 = arith.mulf %431, %425 : vector<2x256xf32>
    %433 = arith.addf %424, %432 : vector<2x256xf32>
    %434 = vector.extract_strided_slice %406 {offsets = [6, 0], sizes = [2, 256], strides = [1, 1]} : vector<8x256xf32> to vector<2x256xf32>
    %c54 = arith.constant 54 : index
    %435 = memref.load %arg3[%c54] : memref<72xf32, #tpu.memory_space<smem>>
    %436 = vector.broadcast %435 : f32 to vector<2x256xf32>
    %437 = arith.mulf %436, %434 : vector<2x256xf32>
    %438 = arith.addf %429, %437 : vector<2x256xf32>
    %c55 = arith.constant 55 : index
    %439 = memref.load %arg3[%c55] : memref<72xf32, #tpu.memory_space<smem>>
    %440 = vector.broadcast %439 : f32 to vector<2x256xf32>
    %441 = arith.mulf %440, %434 : vector<2x256xf32>
    %442 = arith.addf %433, %441 : vector<2x256xf32>
    %443 = arith.addi %47, %73 : vector<1x256xi32>
    %c-16_i32 = arith.constant -16 : i32
    %444 = vector.broadcast %c-16_i32 : i32 to vector<1x256xi32>
    %445 = arith.cmpi eq, %443, %444 : vector<1x256xi32>
    %446 = vector.shape_cast %445 : vector<1x256xi1> to vector<1x256xi1>
    %447 = vector.broadcast %446 : vector<1x256xi1> to vector<8x256xi1>
    %448 = arith.select %447, %168, %173 : vector<8x256xi1>, vector<8x256xf32>
    %449 = vector.extract_strided_slice %448 {offsets = [0, 0], sizes = [2, 256], strides = [1, 1]} : vector<8x256xf32> to vector<2x256xf32>
    %c56 = arith.constant 56 : index
    %450 = memref.load %arg3[%c56] : memref<72xf32, #tpu.memory_space<smem>>
    %451 = vector.broadcast %450 : f32 to vector<2x256xf32>
    %452 = arith.mulf %451, %449 : vector<2x256xf32>
    %453 = arith.addf %438, %452 : vector<2x256xf32>
    %c57 = arith.constant 57 : index
    %454 = memref.load %arg3[%c57] : memref<72xf32, #tpu.memory_space<smem>>
    %455 = vector.broadcast %454 : f32 to vector<2x256xf32>
    %456 = arith.mulf %455, %449 : vector<2x256xf32>
    %457 = arith.addf %442, %456 : vector<2x256xf32>
    %458 = vector.extract_strided_slice %448 {offsets = [2, 0], sizes = [2, 256], strides = [1, 1]} : vector<8x256xf32> to vector<2x256xf32>
    %c58 = arith.constant 58 : index
    %459 = memref.load %arg3[%c58] : memref<72xf32, #tpu.memory_space<smem>>
    %460 = vector.broadcast %459 : f32 to vector<2x256xf32>
    %461 = arith.mulf %460, %458 : vector<2x256xf32>
    %462 = arith.addf %453, %461 : vector<2x256xf32>
    %c59 = arith.constant 59 : index
    %463 = memref.load %arg3[%c59] : memref<72xf32, #tpu.memory_space<smem>>
    %464 = vector.broadcast %463 : f32 to vector<2x256xf32>
    %465 = arith.mulf %464, %458 : vector<2x256xf32>
    %466 = arith.addf %457, %465 : vector<2x256xf32>
    %467 = vector.extract_strided_slice %448 {offsets = [4, 0], sizes = [2, 256], strides = [1, 1]} : vector<8x256xf32> to vector<2x256xf32>
    %c60 = arith.constant 60 : index
    %468 = memref.load %arg3[%c60] : memref<72xf32, #tpu.memory_space<smem>>
    %469 = vector.broadcast %468 : f32 to vector<2x256xf32>
    %470 = arith.mulf %469, %467 : vector<2x256xf32>
    %471 = arith.addf %462, %470 : vector<2x256xf32>
    %c61 = arith.constant 61 : index
    %472 = memref.load %arg3[%c61] : memref<72xf32, #tpu.memory_space<smem>>
    %473 = vector.broadcast %472 : f32 to vector<2x256xf32>
    %474 = arith.mulf %473, %467 : vector<2x256xf32>
    %475 = arith.addf %466, %474 : vector<2x256xf32>
    %476 = vector.extract_strided_slice %448 {offsets = [6, 0], sizes = [2, 256], strides = [1, 1]} : vector<8x256xf32> to vector<2x256xf32>
    %c62 = arith.constant 62 : index
    %477 = memref.load %arg3[%c62] : memref<72xf32, #tpu.memory_space<smem>>
    %478 = vector.broadcast %477 : f32 to vector<2x256xf32>
    %479 = arith.mulf %478, %476 : vector<2x256xf32>
    %480 = arith.addf %471, %479 : vector<2x256xf32>
    %c63 = arith.constant 63 : index
    %481 = memref.load %arg3[%c63] : memref<72xf32, #tpu.memory_space<smem>>
    %482 = vector.broadcast %481 : f32 to vector<2x256xf32>
    %483 = arith.mulf %482, %476 : vector<2x256xf32>
    %484 = arith.addf %475, %483 : vector<2x256xf32>
    %485 = arith.addi %47, %86 : vector<1x256xi32>
    %c-17_i32_42 = arith.constant -17 : i32
    %486 = vector.broadcast %c-17_i32_42 : i32 to vector<1x256xi32>
    %487 = arith.cmpi eq, %485, %486 : vector<1x256xi32>
    %488 = vector.shape_cast %487 : vector<1x256xi1> to vector<1x256xi1>
    %489 = vector.broadcast %488 : vector<1x256xi1> to vector<8x256xi1>
    %490 = arith.select %489, %104, %125 : vector<8x256xi1>, vector<8x256xf32>
    %c-15_i32_43 = arith.constant -15 : i32
    %491 = vector.broadcast %c-15_i32_43 : i32 to vector<1x256xi32>
    %492 = arith.cmpi eq, %485, %491 : vector<1x256xi32>
    %493 = vector.shape_cast %492 : vector<1x256xi1> to vector<1x256xi1>
    %494 = vector.broadcast %493 : vector<1x256xi1> to vector<8x256xi1>
    %495 = arith.select %494, %109, %490 : vector<8x256xi1>, vector<8x256xf32>
    %c15_i32_44 = arith.constant 15 : i32
    %496 = vector.broadcast %c15_i32_44 : i32 to vector<1x256xi32>
    %497 = arith.cmpi eq, %485, %496 : vector<1x256xi32>
    %498 = vector.shape_cast %497 : vector<1x256xi1> to vector<1x256xi1>
    %499 = vector.broadcast %498 : vector<1x256xi1> to vector<8x256xi1>
    %500 = arith.select %499, %117, %495 : vector<8x256xi1>, vector<8x256xf32>
    %501 = vector.extract_strided_slice %500 {offsets = [0, 0], sizes = [2, 256], strides = [1, 1]} : vector<8x256xf32> to vector<2x256xf32>
    %c64 = arith.constant 64 : index
    %502 = memref.load %arg3[%c64] : memref<72xf32, #tpu.memory_space<smem>>
    %503 = vector.broadcast %502 : f32 to vector<2x256xf32>
    %504 = arith.mulf %503, %501 : vector<2x256xf32>
    %505 = arith.addf %480, %504 : vector<2x256xf32>
    %c65 = arith.constant 65 : index
    %506 = memref.load %arg3[%c65] : memref<72xf32, #tpu.memory_space<smem>>
    %507 = vector.broadcast %506 : f32 to vector<2x256xf32>
    %508 = arith.mulf %507, %501 : vector<2x256xf32>
    %509 = arith.addf %484, %508 : vector<2x256xf32>
    %510 = vector.extract_strided_slice %500 {offsets = [2, 0], sizes = [2, 256], strides = [1, 1]} : vector<8x256xf32> to vector<2x256xf32>
    %c66 = arith.constant 66 : index
    %511 = memref.load %arg3[%c66] : memref<72xf32, #tpu.memory_space<smem>>
    %512 = vector.broadcast %511 : f32 to vector<2x256xf32>
    %513 = arith.mulf %512, %510 : vector<2x256xf32>
    %514 = arith.addf %505, %513 : vector<2x256xf32>
    %c67 = arith.constant 67 : index
    %515 = memref.load %arg3[%c67] : memref<72xf32, #tpu.memory_space<smem>>
    %516 = vector.broadcast %515 : f32 to vector<2x256xf32>
    %517 = arith.mulf %516, %510 : vector<2x256xf32>
    %518 = arith.addf %509, %517 : vector<2x256xf32>
    %519 = vector.extract_strided_slice %500 {offsets = [4, 0], sizes = [2, 256], strides = [1, 1]} : vector<8x256xf32> to vector<2x256xf32>
    %c68 = arith.constant 68 : index
    %520 = memref.load %arg3[%c68] : memref<72xf32, #tpu.memory_space<smem>>
    %521 = vector.broadcast %520 : f32 to vector<2x256xf32>
    %522 = arith.mulf %521, %519 : vector<2x256xf32>
    %523 = arith.addf %514, %522 : vector<2x256xf32>
    %c69 = arith.constant 69 : index
    %524 = memref.load %arg3[%c69] : memref<72xf32, #tpu.memory_space<smem>>
    %525 = vector.broadcast %524 : f32 to vector<2x256xf32>
    %526 = arith.mulf %525, %519 : vector<2x256xf32>
    %527 = arith.addf %518, %526 : vector<2x256xf32>
    %528 = vector.extract_strided_slice %500 {offsets = [6, 0], sizes = [2, 256], strides = [1, 1]} : vector<8x256xf32> to vector<2x256xf32>
    %c70 = arith.constant 70 : index
    %529 = memref.load %arg3[%c70] : memref<72xf32, #tpu.memory_space<smem>>
    %530 = vector.broadcast %529 : f32 to vector<2x256xf32>
    %531 = arith.mulf %530, %528 : vector<2x256xf32>
    %532 = arith.addf %523, %531 : vector<2x256xf32>
    %c71 = arith.constant 71 : index
    %533 = memref.load %arg3[%c71] : memref<72xf32, #tpu.memory_space<smem>>
    %534 = vector.broadcast %533 : f32 to vector<2x256xf32>
    %535 = arith.mulf %534, %528 : vector<2x256xf32>
    %536 = arith.addf %527, %535 : vector<2x256xf32>
    %cst = arith.constant 0.000000e+00 : f32
    %537 = vector.broadcast %cst : f32 to vector<2x256xf32>
    %538 = arith.maximumf %532, %537 : vector<2x256xf32>
    %cst_45 = arith.constant 0.000000e+00 : f32
    %539 = vector.broadcast %cst_45 : f32 to vector<2x256xf32>
    %540 = arith.maximumf %536, %539 : vector<2x256xf32>
    %c0_46 = arith.constant 0 : index
    %c0_47 = arith.constant 0 : index
    %541 = vector.load %arg5[%c0_46, %c0_47] : memref<8x2xf32, #tpu.memory_space<vmem>>, vector<8x2xf32>
    %c0_48 = arith.constant 0 : index
    %c0_49 = arith.constant 0 : index
    %542 = vector.load %arg6[%c0_48, %c0_49] : memref<8x1xf32, #tpu.memory_space<vmem>>, vector<8x1xf32>
    %543 = vector.shape_cast %542 : vector<8x1xf32> to vector<8x1xf32>
    %544 = vector.broadcast %543 : vector<8x1xf32> to vector<8x256xf32>
    %545 = vector.extract_strided_slice %541 {offsets = [0, 0], sizes = [8, 1], strides = [1, 1]} : vector<8x2xf32> to vector<8x1xf32>
    %546 = vector.extract_strided_slice %538 {offsets = [0, 0], sizes = [1, 256], strides = [1, 1]} : vector<2x256xf32> to vector<1x256xf32>
    %547 = vector.broadcast %545 : vector<8x1xf32> to vector<8x256xf32>
    %548 = vector.broadcast %546 : vector<1x256xf32> to vector<8x256xf32>
    %549 = arith.mulf %547, %548 : vector<8x256xf32>
    %550 = arith.addf %544, %549 : vector<8x256xf32>
    %551 = vector.extract_strided_slice %541 {offsets = [0, 1], sizes = [8, 1], strides = [1, 1]} : vector<8x2xf32> to vector<8x1xf32>
    %552 = vector.extract_strided_slice %540 {offsets = [0, 0], sizes = [1, 256], strides = [1, 1]} : vector<2x256xf32> to vector<1x256xf32>
    %553 = vector.broadcast %551 : vector<8x1xf32> to vector<8x256xf32>
    %554 = vector.broadcast %552 : vector<1x256xf32> to vector<8x256xf32>
    %555 = arith.mulf %553, %554 : vector<8x256xf32>
    %556 = arith.addf %550, %555 : vector<8x256xf32>
    %cst_50 = arith.constant 0.000000e+00 : f32
    %557 = vector.broadcast %cst_50 : f32 to vector<8x256xf32>
    %558 = arith.maximumf %556, %557 : vector<8x256xf32>
    %c0_51 = arith.constant 0 : index
    %c0_52 = arith.constant 0 : index
    %559 = vector.load %arg7[%c0_51, %c0_52] : memref<16x256xf32, #tpu.memory_space<vmem>>, vector<8x256xf32>
    tpu.vector_store %arg7[%c0_51, %c0_52], %558 {strides = array<i32>} : memref<16x256xf32, #tpu.memory_space<vmem>>, vector<8x256xf32>,
    %560 = vector.shape_cast %542 : vector<8x1xf32> to vector<8x1xf32>
    %561 = vector.broadcast %560 : vector<8x1xf32> to vector<8x256xf32>
    %562 = vector.extract_strided_slice %541 {offsets = [0, 0], sizes = [8, 1], strides = [1, 1]} : vector<8x2xf32> to vector<8x1xf32>
    %563 = vector.extract_strided_slice %538 {offsets = [1, 0], sizes = [1, 256], strides = [1, 1]} : vector<2x256xf32> to vector<1x256xf32>
    %564 = vector.broadcast %562 : vector<8x1xf32> to vector<8x256xf32>
    %565 = vector.broadcast %563 : vector<1x256xf32> to vector<8x256xf32>
    %566 = arith.mulf %564, %565 : vector<8x256xf32>
    %567 = arith.addf %561, %566 : vector<8x256xf32>
    %568 = vector.extract_strided_slice %541 {offsets = [0, 1], sizes = [8, 1], strides = [1, 1]} : vector<8x2xf32> to vector<8x1xf32>
    %569 = vector.extract_strided_slice %540 {offsets = [1, 0], sizes = [1, 256], strides = [1, 1]} : vector<2x256xf32> to vector<1x256xf32>
    %570 = vector.broadcast %568 : vector<8x1xf32> to vector<8x256xf32>
    %571 = vector.broadcast %569 : vector<1x256xf32> to vector<8x256xf32>
    %572 = arith.mulf %570, %571 : vector<8x256xf32>
    %573 = arith.addf %567, %572 : vector<8x256xf32>
    %cst_53 = arith.constant 0.000000e+00 : f32
    %574 = vector.broadcast %cst_53 : f32 to vector<8x256xf32>
    %575 = arith.maximumf %573, %574 : vector<8x256xf32>
    %c8_54 = arith.constant 8 : index
    %c0_55 = arith.constant 0 : index
    %576 = vector.load %arg7[%c8_54, %c0_55] : memref<16x256xf32, #tpu.memory_space<vmem>>, vector<8x256xf32>
    tpu.vector_store %arg7[%c8_54, %c0_55], %575 {strides = array<i32>} : memref<16x256xf32, #tpu.memory_space<vmem>>, vector<8x256xf32>,
    return
  }
  func.func @transform_0(%arg0: i32) -> (i32, i32) {
    %c0_i32 = arith.constant 0 : i32
    %c0_i32_0 = arith.constant 0 : i32
    return %arg0, %c0_i32 : i32, i32
  }
  func.func @transform_1(%arg0: i32) -> (i32, i32) {
    %c0_i32 = arith.constant 0 : i32
    %c0_i32_0 = arith.constant 0 : i32
    %c0_i32_1 = arith.constant 0 : i32
    return %c0_i32, %c0_i32_0 : i32, i32
  }
  func.func @transform_2(%arg0: i32) -> i32 {
    %c0_i32 = arith.constant 0 : i32
    %c0_i32_0 = arith.constant 0 : i32
    return %c0_i32 : i32
  }
  func.func @transform_3(%arg0: i32) -> i32 {
    %c0_i32 = arith.constant 0 : i32
    %c0_i32_0 = arith.constant 0 : i32
    return %c0_i32 : i32
  }
  func.func @transform_4(%arg0: i32) -> (i32, i32) {
    %c0_i32 = arith.constant 0 : i32
    %c0_i32_0 = arith.constant 0 : i32
    %c0_i32_1 = arith.constant 0 : i32
    return %c0_i32, %c0_i32_0 : i32, i32
  }
  func.func @transform_5(%arg0: i32) -> (i32, i32) {
    %c0_i32 = arith.constant 0 : i32
    %c0_i32_0 = arith.constant 0 : i32
    %c0_i32_1 = arith.constant 0 : i32
    return %c0_i32, %c0_i32_0 : i32, i32
  }
  func.func @transform_6(%arg0: i32) -> (i32, i32) {
    %c0_i32 = arith.constant 0 : i32
    %c0_i32_0 = arith.constant 0 : i32
    return %arg0, %c0_i32 : i32, i32
  }
}

</mosaic_0001>

<bundles_post_ra>
// kernel: tpu_custom_call.1
= control target key start
LH: loop header
LB: loop body
LE: loop exit
PB: predicated region body
PF: predicated region fallthrough
CT: control target
= control target key end

     0   :  { %s2920_s0 = inlined_call_operand.vmem [shape: f32[8,256], index: 0, kind: input, shape index: {}]   ;;  %s2921_s1 = inlined_call_operand.vmem [shape: s32[2,256], index: 1, kind: input, shape index: {}]   ;;  %s2922_s2 = inlined_call_operand.vmem [shape: f32[72], index: 2, kind: input, shape index: {}]   ;;  %s2923_s3 = inlined_call_operand.vmem [shape: f32[2], index: 3, kind: input, shape index: {}]   ;;  %s2924_s4 = inlined_call_operand.vmem [shape: f32[8,2], index: 4, kind: input, shape index: {}]   ;;  %s2925_s5 = inlined_call_operand.vmem [shape: f32[8,1], index: 5, kind: input, shape index: {}]   ;;  %s2926_s6 = inlined_call_operand.hbm [shape: f32[16,256], index: 6, kind: output, shape index: {}]  }
   0x1   :  { %3025 = sst [smem:[#allocation75_spill]] %s2926_s6 }
   0x2   :  { %11 = vsyncpa [#allocation4], 0 }
   0x3   :  { %12 = vsyncpa [#allocation6], 0 }
   0x4   :  { %13 = vsyncpa [#allocation3], 0  ;;  %s24_s23 = sshll.u32 %s2922_s2, 4  ;;  %s34_s26 = sshll.u32 %s2923_s3, 4  ;;  %s25_s23 = int_to_ptr.vmem [resolvable:$true] %s24_s23  ;;  %s35_s26 = int_to_ptr.vmem [resolvable:$true] %s34_s26 }
   0x5   :  { %s1520_s27 = scalar_lea.vmem %s25_s23, 16  ;;  %p1525_p1 = scmp.lt.s32.totalorder %s25_s23, %s25_s23 }
   0x6   :  { %p1521_p0 = scmp.ne.s32.totalorder %s25_s23, %s1520_s27  ;;  %p1526_p2 = scmp.lt.s32.totalorder %s1520_s27, %s1520_s27 }
   0x8   :  { %p1527_p3 = por %p1526_p2, %p1525_p1 }
   0xa   :  { %p1528_p4 = pnand %p1527_p3, %p1521_p0 }
   0xc   :  { %1531 = shalt.err (!%p1528_p4)
}
   0xd   :  { %s1572_s28 = smov [#allocation2]   ;;  %s1532_s29 = scalar_lea.vmem %s35_s26, 16 }
   0xe   :  { %27 = dma.vmem_to_smem %s25_s23, 16, %s1572_s28, [#allocation4]  }
   0xf   :  { %p1533_p5 = scmp.ne.s32.totalorder %s35_s26, %s1532_s29  ;;  %p1537_p6 = scmp.lt.s32.totalorder %s35_s26, %s35_s26 }
  0x10   :  { %p1538_p7 = scmp.lt.s32.totalorder %s1532_s29, %s1532_s29 }
  0x12   :  { %p1539_p8 = por %p1538_p7, %p1537_p6 }
  0x14   :  { %p1540_p9 = pnand %p1539_p8, %p1533_p5 }
  0x16   :  { %1543 = shalt.err (!%p1540_p9)
}
  0x17   :  { %s1573_s2 = smov [#allocation5]  }
  0x18   :  { %37 = dma.vmem_to_smem %s35_s26, 16, %s1573_s2, [#allocation6]  }
  0x19   :  { %1566 = dma.done.wait [#allocation4], 16  }
  0x1a   :  { %1567 = vsyncadd [#allocation4], 4294967280 }
  0x1b   :  { %1568 = dma.done.wait [#allocation6], 16  }
  0x1c   :  { %1569 = vsyncadd [#allocation6], 4294967280 }
  0x1d   :  { %48 = sfence }
  0x1e   :  { %v77_v0 = vld [vmem:[%s2920_s0 + $0x8] sm:$0xff]  ;;  %vm104_vm0 = vcmask 1040384   ;;  %vm107_vm1 = vcmask 1041408   ;;  %vm110_vm2 = vcmask 1042432   ;;  %v76_v4 = vld [vmem:[%s2920_s0] sm:$0xff]  ;;  %vm113_vm3 = vcmask 1043456  }
  0x1f   :  { %v81_v1 = vrot.slane %v77_v0, 3  ;;  %v85_v2 = vrot.slane %v77_v0, 7  ;;  %v89_v3 = vrot.slane %v77_v0, 2  ;;  %v93_v5 = vrot.slane %v77_v0, 6  ;;  %s1575_s0 = smov 15   ;;  %s1576_s9 = smov 17  }
  0x20   :  { %v97_v6 = vrot.slane %v77_v0, 1  ;;  %v101_v7 = vrot.slane %v77_v0, 5  ;;  %vm116_vm4 = vcmask 1044480   ;;  %v80_v9 = vrot.slane %v76_v4, 3  ;;  %s1577_s10 = smov 113   ;;  %s1578_s11 = smov 111  }
  0x21   :  { %v106_v8 = vsel %vm104_vm0, %v77_v0, %v81_v1  ;;  %v84_v10 = vrot.slane %v76_v4, 7  ;;  %vm119_vm5 = vcmask 1045504   ;;  %v88_v12 = vrot.slane %v76_v4, 2  ;;  %s2927_s12 = smov 16   ;;  %s1580_s13 = smov 112   ;;  %v1338_v29 = vld [vmem:[%s2925_s5] sm:$0xff] }
  0x22   :  { %v109_v11 = vsel %vm107_vm1, %v106_v8, %v85_v2  ;;  %v92_v13 = vrot.slane %v76_v4, 6  ;;  %v96_v15 = vrot.slane %v76_v4, 1  ;;  %v105_v16 = vsel %vm104_vm0, %v76_v4, %v80_v9  ;;  %s1581_s14 = smov 1   ;;  %s1582_s15 = smov 127   ;;  %v1337_v30 = vld [vmem:[%s2924_s4] sm:$0xff] }
  0x23   :  { %v112_v14 = vsel %vm110_vm2, %v109_v11, %v89_v3  ;;  %vm122_vm6 = vcmask 1046528   ;;  %v100_v18 = vrot.slane %v76_v4, 5  ;;  %v108_v19 = vsel %vm107_vm1, %v105_v16, %v84_v10  ;;  %v1680_v32 = vld [vmem:[%s2921_s1] sm:$0xf]  ;;  %s1686_s1 = sld [smem:[#allocation2]]  ;;  %s1688_s4 = sld [smem:[#allocation2 + $0x1]] }
  0x24   :  { %v115_v17 = vsel %vm113_vm3, %v112_v14, %v93_v5  ;;  %v1574_v20 = vmov 0   ;;  %v111_v22 = vsel %vm110_vm2, %v108_v19, %v88_v12  ;;  %v1583_v31 = vmov 1   ;;  %s1690_s5 = sld [smem:[#allocation5]]  ;;  %s1692_s22 = sld [smem:[#allocation2 + $0x2]] }
  0x25   :  { %1517 = vset.pattern.permute.xlu1 %v1574_v20  ;;  %1516 = vset.pattern.permute.xlu0 %v1574_v20  ;;  %v118_v21 = vsel %vm116_vm4, %v115_v17, %v97_v6  ;;  %v114_v24 = vsel %vm113_vm3, %v111_v22, %v92_v13  ;;  %v50_v33 = vadd.s32 4294967295, %v1680_v32  ;;  %v67_v34 = vadd.s32 1, %v1680_v32  ;;  %s1694_s23 = sld [smem:[#allocation5 + $0x1]]  ;;  %s1696_s24 = sld [smem:[#allocation2 + $0x3]] }
  0x26   :  { %v121_v23 = vsel %vm119_vm5, %v118_v21, %v101_v7  ;;  %v117_v26 = vsel %vm116_vm4, %v114_v24, %v96_v15  ;;  %v156_v46 = vlaneseq  ;;  %s1698_s25 = sld [smem:[#allocation2 + $0x4]]  ;;  %s1700_s26 = sld [smem:[#allocation2 + $0x5]]  ;;  %v60_v53 = vsub.s32 0, %v1680_v32 }
  0x27   :  { %v1646_v25 = vsel %vm122_vm6, %v121_v23, %v77_v0  ;;  %v120_v27 = vsel %vm119_vm5, %v117_v26, %v100_v18  ;;  %v52_v35 = vsub.s32 0, %v50_v33  ;;  %v69_v36 = vsub.s32 0, %v67_v34  ;;  %s1702_s27 = sld [smem:[#allocation2 + $0x6]]  ;;  %s1704_s28 = sld [smem:[#allocation2 + $0x7]] }
  0x28   :  { %145 = vrot.lane.b32.xlu1 %v1646_v25, %s1575_s0  ;;  %133 = vrot.lane.b32.xlu0 %v1646_v25, %s1576_s9  ;;  %v1653_v28 = vsel %vm122_vm6, %v120_v27, %v76_v4  ;;  %s1710_s29 = sld [smem:[#allocation2 + $0x10]]  ;;  %s1712_s2 = sld [smem:[#allocation2 + $0x11]]  ;;  %v1714_v50 = vshrl.u32 %v156_v46, 7  ;;  %v1428_v4 = vmin.u32 %v60_v53, %v1680_v32 }
  0x29   :  { %v1427_v37 = vmin.u32 %v52_v35, %v50_v33  ;;  %v1429_v38 = vmin.u32 %v69_v36, %v67_v34  ;;  %s1718_s3 = sld [smem:[#allocation2 + $0x12]]  ;;  %s1720_s30 = sld [smem:[#allocation2 + $0x13]] }
  0x2a   :  { %3032 = vst [vmem:[#allocation17_spill] sm:$0xff] %v1714_v50  ;;  %s1722_s7 = sld [smem:[#allocation2 + $0x14]]  ;;  %s1724_s8 = sld [smem:[#allocation2 + $0x15]]  ;;  %v1738_v54 = vsub.s32 0, %v1714_v50  ;;  %v1741_v55 = vsub.s32 2, %v1714_v50  ;;  %v63_v17 = vsub.s32 30, %v1428_v4  ;;  %v3083_v50 = vstv %s1692_s22 }
  0x2b   :  { %v55_v39 = vsub.s32 30, %v1427_v37  ;;  %vm54_vm7 = vcmp.ge.s32.totalorder %v1427_v37, 16  ;;  %v72_v40 = vsub.s32 30, %v1429_v38  ;;  %vm71_vm8 = vcmp.ge.s32.totalorder %v1429_v38, 16  ;;  %s1768_s16 = sld [smem:[#allocation2 + $0x35]]  ;;  %s1775_s17 = sld [smem:[#allocation2 + $0x36]] }
  0x2c   :  { %148 = vrot.lane.b32.xlu1 %v1653_v28, %s1575_s0  ;;  %137 = vrot.lane.b32.xlu0 %v1653_v28, %s1576_s9  ;;  %3026 = sst [smem:[#allocation11_spill]] %s1698_s25  ;;  %s1726_s0 = sld [smem:[#allocation2 + $0x16]]  ;;  %3040 = vst [vmem:[#allocation25_spill] sm:$0xff] %v1738_v54  ;;  %vm62_vm13 = vcmp.ge.s32.totalorder %v1428_v4, 16 }
  0x2d   :  { %v56_v41 = vsel %vm54_vm7, %v55_v39, %v1427_v37  ;;  %v73_v42 = vsel %vm71_vm8, %v72_v40, %v1429_v38  ;;  %3027 = sst [smem:[#allocation12_spill]] %s1700_s26  ;;  %s1732_s9 = sld [smem:[#allocation2 + $0x17]]  ;;  %v64_v35 = vsel %vm62_vm13, %v63_v17, %v1428_v4 }
  0x2e   :  { %v57_v43 = vsub.s32 %v56_v41, %v1680_v32  ;;  %v74_v44 = vsub.s32 %v73_v42, %v1680_v32  ;;  %3028 = sst [smem:[#allocation13_spill]] %s1702_s27  ;;  %s1796_s18 = sld [smem:[#allocation2 + $0x37]] }
  0x2f   :  { %3029 = sst [smem:[#allocation14_spill]] %s1704_s28  ;;  %s1833_s19 = sld [smem:[#allocation2 + $0x8]] }
  0x30   :  { %179 = vrot.lane.b32.xlu1 %v1646_v25, %s1577_s10  ;;  %177 = vrot.lane.b32.xlu0 %v1653_v28, %s1577_s10  ;;  %v129_v45 = vrot.slane %v57_v43, 7  ;;  %v453_v47 = vrot.slane %v74_v44, 7  ;;  %v1706_v48 = vmul.u32 16, %v57_v43  ;;  %3030 = sst [smem:[#allocation15_spill]] %s1710_s29  ;;  %s1734_s10 = sld [smem:[#allocation2 + $0x30]]  ;;  %v1758_v62 = vmul.u32 16, %v74_v44 }
  0x31   :  { %3031 = sst [smem:[#allocation16_spill]] %s1712_s2  ;;  %s1840_s20 = sld [smem:[#allocation2 + $0x9]] }
  0x32   :  { %v1708_v49 = vrot.slane %v129_v45, 2  ;;  %v1716_v51 = vrot.slane %v453_v47, 2  ;;  %3033 = sst [smem:[#allocation18_spill]] %s1718_s3  ;;  %v1825_v45 = vsub.s32 %v64_v35, %v1680_v32  ;;  %s1842_s21 = sld [smem:[#allocation2 + $0xa]] }
  0x33   :  { %3034 = sst [smem:[#allocation19_spill]] %s1720_s30  ;;  %s1851_s6 = sld [smem:[#allocation2 + $0xc]] }
  0x34   :  { %211 = vrot.lane.b32.xlu1 %v1646_v25, %s1578_s11  ;;  %209 = vrot.lane.b32.xlu0 %v1653_v28, %s1578_s11  ;;  %3035 = sst [smem:[#allocation20_spill]] %s1722_s7  ;;  %v1730_v52 = vadd.s32 %v1708_v49, %v1706_v48  ;;  %v1745_v56 = vadd.s32 %v1716_v51, %v1706_v48  ;;  %s1748_s11 = sld [smem:[#allocation2 + $0x31]]  ;;  %v924_v12 = vadd.s32 %v1708_v49, %v1758_v62  ;;  %v324_v17 = vrot.slane %v1825_v45, 7 }
  0x35   :  { %3036 = sst [smem:[#allocation21_spill]] %s1724_s8  ;;  %v1182_v39 = vadd.s32 %v1716_v51, %v1758_v62  ;;  %s1914_s7 = sld [smem:[#allocation2 + $0x1a]] }
  0x36   :  { %3037 = sst [smem:[#allocation22_spill]] %s1726_s0  ;;  %vm144_vm9 = vcmp.eq.s32.totalorder %v1730_v52, 4294967281  ;;  %vm456_vm10 = vcmp.eq.s32.totalorder %v1745_v56, 4294967279  ;;  %vm176_vm11 = vcmp.eq.s32.totalorder %v1730_v52, 15  ;;  %vm478_vm12 = vcmp.eq.s32.totalorder %v1745_v56, 15  ;;  %s1902_s0 = sld [smem:[#allocation2 + $0x18]] }
  0x37   :  { %3038 = sst [smem:[#allocation23_spill]] %s1732_s9  ;;  %v155_v11 = vsel %vm144_vm9, 1, %v1574_v20  ;;  %v457_v14 = vsel %vm456_vm10, 1, %v1574_v20  ;;  %v187_v18 = vsel %vm176_vm11, 1, %v1574_v20  ;;  %v479_v24 = vsel %vm478_vm12, 1, %v1574_v20  ;;  %s1892_s9 = sld [smem:[#allocation2 + $0x3d]] }
  0x38   :  { %330 = vrot.lane.b32.xlu1 %v1653_v28, %s2927_s12  ;;  %327 = vrot.lane.b32.xlu0 %v1646_v25, %s2927_s12  ;;  %3039 = sst [smem:[#allocation24_spill]] %s1734_s10  ;;  %v159_v22 = vrot.slane %v155_v11, %v1738_v54  ;;  %v163_v23 = vrot.slane %v155_v11, %v1741_v55  ;;  %v461_v27 = vrot.slane %v457_v14, %v1738_v54  ;;  %vm925_vm14 = vcmp.eq.s32.totalorder %v924_v12, 4294967279  ;;  %s1849_s12 = sld [smem:[#allocation2 + $0xb]] }
  0x39   :  { %3045 = sst [smem:[#allocation30_spill]] %s1768_s16  ;;  %v195_v33 = vrot.slane %v187_v18, %v1741_v55  ;;  %v483_v36 = vrot.slane %v479_v24, %v1738_v54  ;;  %v487_v37 = vrot.slane %v479_v24, %v1741_v55  ;;  %v926_v42 = vsel %vm925_vm14, 1, %v1574_v20  ;;  %s1865_s16 = sld [smem:[#allocation2 + $0xf]] }
  0x3a   :  { %3041 = sst [smem:[#allocation26_spill]] %s1748_s11  ;;  %v1810_v40 = vrot.slane %v159_v22, %v1738_v54  ;;  %v1813_v41 = vrot.slane %v163_v23, %v1738_v54  ;;  %vm208_vm15 = vcmp.eq.s32.totalorder %v1730_v52, 17  ;;  %v1818_v43 = vrot.slane %v461_v27, %v1738_v54  ;;  %s1876_s11 = sld [smem:[#allocation2 + $0x39]] }
  0x3b   :  { %3046 = sst [smem:[#allocation31_spill]] %s1775_s17  ;;  %vm500_vm0 = vcmp.eq.s32.totalorder %v1745_v56, 17  ;;  %v1831_v47 = vrot.slane %v195_v33, %v1738_v54  ;;  %vm947_vm1 = vcmp.eq.s32.totalorder %v924_v12, 4294967281  ;;  %vm969_vm2 = vcmp.eq.s32.totalorder %v924_v12, 17  ;;  %s1855_s17 = sld [smem:[#allocation2 + $0xd]] }
  0x3c   :  { %340 = vrot.lane.b32.xlu1 %v1646_v25, %s1580_s13  ;;  %338 = vrot.lane.b32.xlu0 %v1653_v28, %s1580_s13  ;;  %s1750_s13 = sld [smem:[#allocation2 + $0x32]]  ;;  %3047 = sst [smem:[#allocation32_spill]] %s1796_s18  ;;  %v1836_v52 = vrot.slane %v483_v36, %v1738_v54  ;;  %v930_v53 = vrot.slane %v926_v42, %v1738_v54  ;;  %v219_v56 = vsel %vm208_vm15, 1, %v1574_v20  ;;  %vm1183_vm3 = vcmp.eq.s32.totalorder %v1182_v39, 4294967279 }
  0x3d   :  { %3048 = sst [smem:[#allocation33_spill]] %s1833_s19  ;;  %v1845_v32 = vrot.slane %v487_v37, %v1738_v54  ;;  %v501_v11 = vsel %vm500_vm0, 1, %v1574_v20  ;;  %vm1205_vm4 = vcmp.eq.s32.totalorder %v1182_v39, 4294967281  ;;  %v948_v12 = vsel %vm947_vm1, 1, %v1574_v20  ;;  %s1863_s18 = sld [smem:[#allocation2 + $0xe]] }
  0x3e   :  { %3049 = sst [smem:[#allocation34_spill]] %s1840_s20  ;;  %vm1227_vm5 = vcmp.eq.s32.totalorder %v1182_v39, 15  ;;  %v223_v22 = vrot.slane %v219_v56, %v1738_v54  ;;  %v227_v23 = vrot.slane %v219_v56, %v1741_v55  ;;  %v1184_v24 = vsel %vm1183_vm3, 1, %v1574_v20  ;;  %s1883_s10 = sld [smem:[#allocation2 + $0x3a]] }
  0x3f   :  { %3050 = sst [smem:[#allocation35_spill]] %s1842_s21  ;;  %v1868_v27 = vrot.slane %v930_v53, %v1738_v54  ;;  %v1206_v33 = vsel %vm1205_vm4, 1, %v1574_v20  ;;  %v952_v35 = vrot.slane %v948_v12, %v1738_v54  ;;  %v956_v36 = vrot.slane %v948_v12, %v1741_v55  ;;  %s1904_s8 = sld [smem:[#allocation2 + $0x19]] }
  0x40   :  { %610 = vrot.lane.b32.xlu1 %v1653_v28, %s1581_s14  ;;  %607 = vrot.lane.b32.xlu0 %v1646_v25, %s1581_s14  ;;  %s1756_s14 = sld [smem:[#allocation2 + $0x33]]  ;;  %3051 = sst [smem:[#allocation36_spill]] %s1865_s16  ;;  %v1188_v56 = vrot.slane %v1184_v24, %v1738_v54  ;;  %v325_v12 = vrot.slane %v324_v17, 2  ;;  %v1898_v39 = vrot.slane %v223_v22, %v1738_v54  ;;  %v1210_v38 = vrot.slane %v1206_v33, %v1738_v54 }
  0x41   :  { %3056 = sst [smem:[#allocation41_spill]] %s1892_s9  ;;  %v1214_v34 = vrot.slane %v1206_v33, %v1741_v55  ;;  %s1916_s30 = sld [smem:[#allocation2 + $0x1b]]  ;;  %v1922_v33 = vrot.slane %v952_v35, %v1738_v54  ;;  %vm150_vm10 = vcmask 121856   ;;  %vm139_vm11 = vcmask 138240  }
  0x42   :  { %3042 = sst [smem:[#allocation27_spill]] %s1750_s13  ;;  %s1890_s13 = sld [smem:[#allocation2 + $0x3c]]  ;;  %vm181_vm12 = vcmask 924672   ;;  %vm172_vm13 = vcmp.eq.s32.totalorder %v1810_v40, 1  ;;  %vm173_vm14 = vcmp.eq.s32.totalorder %v1813_v41, 1  ;;  %vm205_vm0 = vcmp.eq.s32.totalorder %v1831_v47, 1 }
  0x43   :  { %s1930_s2 = sld [smem:[#allocation2 + $0x1c]]  ;;  %s1932_s29 = sld [smem:[#allocation2 + $0x1d]]  ;;  %vm213_vm1 = vcmask 908288   ;;  %vm474_vm4 = vcmp.eq.s32.totalorder %v1818_v43, 1 }
  0x44   :  { %620 = vrot.lane.b32.xlu1 %v1646_v25, %s1582_s15  ;;  %618 = vrot.lane.b32.xlu0 %v1653_v28, %s1582_s15  ;;  %s1763_s15 = sld [smem:[#allocation2 + $0x34]]  ;;  %3053 = sst [smem:[#allocation38_spill]] %s1883_s10 }
  0x45   :  { %s1944_s3 = sld [smem:[#allocation2 + $0x20]]  ;;  %s1946_s28 = sld [smem:[#allocation2 + $0x22]] }
  0x46   :  { %3043 = sst [smem:[#allocation28_spill]] %s1756_s14  ;;  %s1885_s14 = sld [smem:[#allocation2 + $0x3b]] }
  0x47   :  { %s1956_s27 = sld [smem:[#allocation2 + $0x23]]  ;;  %s1958_s26 = sld [smem:[#allocation2 + $0x24]] }
  0x48   :  { %1341 = vperm.xlu1 %1517, %v1338_v29   ;;  %1346 = vperm.xlu0 %1516, %v1337_v30   ;;  %v465_v29 = vrot.slane %v457_v14, %v1741_v55  ;;  %v970_v14 = vsel %vm969_vm2, 1, %v1574_v20  ;;  %3055 = sst [smem:[#allocation40_spill]] %s1890_s13  ;;  %s1967_s25 = sld [smem:[#allocation2 + $0x21]]  ;;  %vm236_vm2 = vcmp.eq.s32.totalorder %v1898_v39, 1 }
  0x49   :  { %v974_v37 = vrot.slane %v970_v14, %v1738_v54  ;;  %v978_v53 = vrot.slane %v970_v14, %v1741_v55  ;;  %v1907_v14 = vrot.slane %v227_v23, %v1738_v54  ;;  %v1925_v23 = vrot.slane %v956_v36, %v1738_v54  ;;  %s1969_s19 = sld [smem:[#allocation2 + $0x25]]  ;;  %s1979_s20 = sld [smem:[#allocation2 + $0x1e]] }
  0x4a   :  { %3044 = sst [smem:[#allocation29_spill]] %s1763_s15  ;;  %v1821_v44 = vrot.slane %v465_v29, %v1738_v54  ;;  %v505_v29 = vrot.slane %v501_v11, %v1738_v54  ;;  %v326_v36 = vadd.s32 %v325_v12, %v1706_v48  ;;  %s1984_s21 = sld [smem:[#allocation2 + $0x1f]] }
  0x4b   :  { %s1874_s15 = sld [smem:[#allocation2 + $0x38]]  ;;  %s1988_s16 = sld [smem:[#allocation2 + $0x26]]  ;;  %v746_v19 = vstv %s1946_s28  ;;  %vm237_vm3 = vcmp.eq.s32.totalorder %v1907_v14, 1 }
  0x4c   :  { %1518 = vset.pattern.permute.xlu1 %v1583_v31  ;;  %1519 = vset.pattern.permute.xlu0 %v1583_v31  ;;  %v191_v31 = vrot.slane %v187_v18, %v1738_v54  ;;  %v934_v18 = vrot.slane %v926_v42, %v1741_v55  ;;  %v1228_v42 = vsel %vm1227_vm5, 1, %v1574_v20  ;;  %3054 = sst [smem:[#allocation39_spill]] %s1885_s14  ;;  %vm337_vm6 = vcmp.eq.s32.totalorder %v326_v36, 16  ;;  %s2004_s13 = sld [smem:[#allocation2 + $0x28]] }
  0x4d   :  { %1362 = vperm.xlu1 %1518, %v1337_v30   ;;  %v1232_v17 = vrot.slane %v1228_v42, %v1738_v54  ;;  %v348_v21 = vsel %vm337_vm6, 1, %v1574_v20  ;;  %s2006_s9 = sld [smem:[#allocation2 + $0x29]]  ;;  %v770_v30 = vstv %s1958_s26  ;;  %s2012_s14 = sld [smem:[#allocation2 + $0x2a]]  ;;  %v2092_v59 = vmul.f32 %v746_v19, %v1653_v28 }
  0x4e   :  { %v1828_v46 = vrot.slane %v191_v31, %v1738_v54  ;;  %v509_v31 = vrot.slane %v501_v11, %v1741_v55  ;;  %v1192_v11 = vrot.slane %v1184_v24, %v1741_v55  ;;  %v1895_v4 = vrot.slane %v934_v18, %v1738_v54  ;;  %s2018_s28 = sld [smem:[#allocation2 + $0x2b]]  ;;  %s2020_s10 = sld [smem:[#allocation2 + $0x2c]] }
  0x4f   :  { %v1910_v24 = vrot.slane %v505_v29, %v1738_v54  ;;  %v1236_v18 = vrot.slane %v1228_v42, %v1741_v55  ;;  %v1928_v29 = vrot.slane %v974_v37, %v1738_v54  ;;  %v1935_v42 = vrot.slane %v978_v53, %v1738_v54  ;;  %s2027_s26 = sld [smem:[#allocation2 + $0x2d]]  ;;  %3070 = vst [vmem:[#allocation55_spill] sm:$0xff] %v2092_v59  ;;  %s3102_s22 = sld [smem:[#allocation18_spill]] }
  0x50   :  { %v1919_v22 = vrot.slane %v509_v31, %v1738_v54  ;;  %v1938_v31 = vrot.slane %v1188_v56, %v1738_v54  ;;  %v1941_v35 = vrot.slane %v1192_v11, %v1738_v54  ;;  %v1949_v37 = vrot.slane %v1210_v38, %v1738_v54 }
  0x51   :  { %3052 = sst [smem:[#allocation37_spill]] %s1874_s15  ;;  %v1952_v53 = vrot.slane %v1214_v34, %v1738_v54  ;;  %v1075_v11 = vadd.s32 %v325_v12, %v1758_v62  ;;  %v1961_v48 = vrot.slane %v1232_v17, %v1738_v54  ;;  %v1964_v38 = vrot.slane %v1236_v18, %v1738_v54  ;;  %s1990_s15 = sld [smem:[#allocation2 + $0x27]] }
  0x52   :  { %v66_v62 = vmul.u32 16, %v1825_v45  ;;  %3057 = sst [smem:[#allocation42_spill]] %s2004_s13  ;;  %v352_v18 = vrot.slane %v348_v21, %v1738_v54  ;;  %v356_v45 = vrot.slane %v348_v21, %v1741_v55  ;;  %v740_v16 = vstv %s1967_s25  ;;  %s2126_s13 = sld [smem:[#allocation2 + $0x40]] }
  0x53   :  { %vm1076_vm7 = vcmp.eq.s32.totalorder %v1075_v11, 4294967280  ;;  %3058 = sst [smem:[#allocation43_spill]] %s2006_s9  ;;  %v782_v26 = vstv %s1969_s19  ;;  %v2025_v56 = vmul.f32 %v746_v19, %v1646_v25  ;;  %v2034_v15 = vmul.f32 %v770_v30, %v1646_v25  ;;  %s2053_s19 = sld [smem:[#allocation2 + $0x2f]] }
  0x54   :  { %v606_v36 = vadd.s32 %v1708_v49, %v66_v62  ;;  %v1994_v34 = vadd.s32 %v1716_v51, %v66_v62  ;;  %v1077_v17 = vsel %vm1076_vm7, 1, %v1574_v20  ;;  %v734_v51 = vstv %s1944_s3  ;;  %3059 = sst [smem:[#allocation44_spill]] %s2012_s14  ;;  %s2110_s9 = sld [smem:[#allocation2 + $0x45]] }
  0x55   :  { %v758_v62 = vstv %s1956_s27  ;;  %3060 = sst [smem:[#allocation45_spill]] %s2018_s28  ;;  %v1081_v49 = vrot.slane %v1077_v17, %v1738_v54  ;;  %v1085_v11 = vrot.slane %v1077_v17, %v1741_v55  ;;  %3062 = vst [vmem:[#allocation47_spill] sm:$0xff] %v2025_v56  ;;  %3065 = vst [vmem:[#allocation50_spill] sm:$0xff] %v2034_v15  ;;  %v2041_v17 = vmul.f32 %v734_v51, %v1646_v25  ;;  %s2051_s27 = sld [smem:[#allocation2 + $0x2e]] }
  0x56   :  { %3061 = sst [smem:[#allocation46_spill]] %s2020_s10  ;;  %vm617_vm8 = vcmp.eq.s32.totalorder %v606_v36, 1  ;;  %v2031_v12 = vmul.f32 %v758_v62, %v1646_v25  ;;  %vm818_vm9 = vcmp.eq.s32.totalorder %v1994_v34, 4294967295  ;;  %v2046_v10 = vmul.f32 %v740_v16, %v1646_v25  ;;  %s2108_s10 = sld [smem:[#allocation2 + $0x43]] }
  0x57   :  { %3063 = sst [smem:[#allocation48_spill]] %s2027_s26  ;;  %v2049_v9 = vmul.f32 %v782_v26, %v1646_v25  ;;  %v2056_v13 = vrot.slane %v352_v18, %v1738_v54  ;;  %v2059_v21 = vrot.slane %v356_v45, %v1738_v54  ;;  %v794_v8 = vstv %s1988_s16  ;;  %s2096_s16 = sld [smem:[#allocation2 + $0x41]] }
  0x58   :  { %3064 = vst [vmem:[#allocation49_spill] sm:$0xff] %v2031_v12  ;;  %3066 = vst [vmem:[#allocation51_spill] sm:$0xff] %v2046_v10  ;;  %v806_v6 = vstv %s1990_s15  ;;  %v2064_v5 = vrot.slane %v1081_v49, %v1738_v54  ;;  %v2067_v7 = vrot.slane %v1085_v11, %v1738_v54  ;;  %v628_v2 = vsel %vm617_vm8, 1, %v1574_v20  ;;  %s2094_s15 = sld [smem:[#allocation2 + $0x3f]]  ;;  %s2146_s28 = sld [smem:[#allocation2 + $0x42]] }
  0x59   :  { %3067 = vst [vmem:[#allocation52_spill] sm:$0xff] %v2049_v9  ;;  %v2080_v36 = vmul.f32 %v794_v8, %v1646_v25  ;;  %v2083_v49 = vmul.f32 %v806_v6, %v1646_v25  ;;  %vm204_vm15 = vcmp.eq.s32.totalorder %v1828_v46, 1  ;;  %v632_v1 = vrot.slane %v628_v2, %v1738_v54  ;;  %s2124_s26 = sld [smem:[#allocation2 + $0x47]]  ;;  %s2148_s14 = sld [smem:[#allocation2 + $0x44]] }
  0x5a   :  { %v636_v11 = vrot.slane %v628_v2, %v1741_v55  ;;  %v2103_v58 = vmul.f32 %v758_v62, %v1653_v28  ;;  %v2106_v0 = vmul.f32 %v770_v30, %v1653_v28  ;;  %v2113_v25 = vmul.f32 %v782_v26, %v1653_v28  ;;  %s2195_s25 = sld [smem:[#allocation2 + $0x46]]  ;;  %s3084_s3 = sld [smem:[#allocation11_spill]] }
  0x5b   :  { %3068 = vst [vmem:[#allocation53_spill] sm:$0xff] %v2080_v36  ;;  %3069 = vst [vmem:[#allocation54_spill] sm:$0xff] %v2083_v49  ;;  %v2116_v2 = vmul.f32 %v794_v8, %v1653_v28  ;;  %v2119_v62 = vmul.f32 %v806_v6, %v1653_v28  ;;  %v819_v30 = vsel %vm818_vm9, 1, %v1574_v20  ;;  %v2133_v8 = vrot.slane %v632_v1, %v1738_v54 }
  0x5c   :  { %3071 = vst [vmem:[#allocation56_spill] sm:$0xff] %v2103_v58  ;;  %3072 = vst [vmem:[#allocation57_spill] sm:$0xff] %v2106_v0  ;;  %v2138_v6 = vmul.f32 %v734_v51, %v1653_v28  ;;  %v2143_v20 = vmul.f32 %v740_v16, %v1653_v28  ;;  %v2151_v26 = vrot.slane %v636_v11, %v1738_v54  ;;  %vm475_vm5 = vcmp.eq.s32.totalorder %v1821_v44, 1 }
  0x5d   :  { %3073 = vst [vmem:[#allocation58_spill] sm:$0xff] %v2113_v25  ;;  %3074 = vst [vmem:[#allocation59_spill] sm:$0xff] %v2116_v2  ;;  %v823_v60 = vrot.slane %v819_v30, %v1738_v54  ;;  %v827_v51 = vrot.slane %v819_v30, %v1741_v55  ;;  %vm496_vm6 = vcmp.eq.s32.totalorder %v1836_v52, 1  ;;  %vm497_vm7 = vcmp.eq.s32.totalorder %v1845_v32, 1 }
  0x5e   :  { %3075 = vst [vmem:[#allocation60_spill] sm:$0xff] %v2119_v62  ;;  %3077 = vst [vmem:[#allocation62_spill] sm:$0xff] %v2143_v20  ;;  %vm943_vm8 = vcmp.eq.s32.totalorder %v1868_v27, 1  ;;  %vm944_vm9 = vcmp.eq.s32.totalorder %v1895_v4, 1  ;;  %v3085_v49 = vmov %v3083_v50  ;;  %v3086_v36 = vstv %s1696_s24  ;;  %s3105_s24 = sld [smem:[#allocation16_spill]] }
  0x5f   :  { %3076 = sst [smem:[#allocation61_spill]] %s2124_s26  ;;  %v3087_v9 = vmov %v3086_v36  ;;  %s3089_s26 = sld [smem:[#allocation12_spill]] }
  0x60   :  { %3078 = sst [smem:[#allocation63_spill]] %s2195_s25  ;;  %s3116_s25 = sld [smem:[#allocation23_spill]] }
  0x9a   :  { %v146_v18 = vpop.permute.xlu1 %145  ;;  %v134_v45 = vpop.permute.xlu0 %133 }
  0x9e   :  { %v149_v19 = vpop.permute.xlu1 %148  ;;  %v138_v3 = vpop.permute.xlu0 %137 }
  0x9f   :  { %v2163_v34 = vsel %vm150_vm10, %v149_v19, %v146_v18  ;;  %v2166_v55 = vsel %vm150_vm10, %v146_v18, %v149_v19  ;;  %v2169_v30 = vsel %vm139_vm11, %v138_v3, %v134_v45  ;;  %v2172_v61 = vsel %vm139_vm11, %v134_v45, %v138_v3 }
  0xa0   :  { %vm518_vm10 = vcmp.eq.s32.totalorder %v1910_v24, 1  ;;  %v2188_v45 = vrot.slane %v823_v60, %v1738_v54  ;;  %v2191_v19 = vrot.slane %v827_v51, %v1738_v54  ;;  %v174_v63 = vsel %vm172_vm13, %v2166_v55, %v2172_v61 }
  0xa1   :  { %v175_v60 = vsel %vm173_vm14, %v2163_v34, %v2169_v30  ;;  %vm519_vm11 = vcmp.eq.s32.totalorder %v1919_v22, 1  ;;  %vm966_vm13 = vcmp.eq.s32.totalorder %v1925_v23, 1  ;;  %vm1202_vm14 = vcmp.eq.s32.totalorder %v1941_v35, 1 }
  0xa2   :  { %v180_v28 = vpop.permute.xlu1 %179  ;;  %v178_v16 = vpop.permute.xlu0 %177 }
  0xa3   :  { %v2176_v11 = vsel %vm181_vm12, %v178_v16, %v180_v28  ;;  %v2179_v1 = vsel %vm181_vm12, %v180_v28, %v178_v16  ;;  %vm965_vm12 = vcmp.eq.s32.totalorder %v1922_v33, 1 }
  0xa4   :  { %v206_v40 = vsel %vm204_vm15, %v2176_v11, %v174_v63  ;;  %v207_v41 = vsel %vm205_vm0, %v2179_v1, %v175_v60  ;;  %v3079_v60 = vstv %s1686_s1  ;;  %s2254_s1 = sld [smem:[#allocation2 + $0x3e]]  ;;  %v945_v52 = vsel %vm943_vm8, %v2172_v61, %v2176_v11 }
  0xa5   :  { %v3080_v39 = vmov %v3079_v60  ;;  %vm987_vm15 = vcmp.eq.s32.totalorder %v1928_v29, 1  ;;  %vm988_vm0 = vcmp.eq.s32.totalorder %v1935_v42, 1  ;;  %vm365_vm8 = vcmp.eq.s32.totalorder %v2056_v13, 1 }
  0xa6   :  { %v212_v18 = vpop.permute.xlu1 %211  ;;  %v210_v51 = vpop.permute.xlu0 %209 }
  0xa7   :  { %v2214_v3 = vsel %vm213_vm1, %v210_v51, %v212_v18  ;;  %v2217_v57 = vsel %vm213_vm1, %v212_v18, %v210_v51  ;;  %v3088_v18 = vstv %s1690_s5  ;;  %s3098_s5 = sld [smem:[#allocation14_spill]]  ;;  %vm1201_vm1 = vcmp.eq.s32.totalorder %v1938_v31, 1 }
  0xa8   :  { %v238_v46 = vsel %vm236_vm2, %v2214_v3, %v206_v40  ;;  %v239_v63 = vsel %vm237_vm3, %v2217_v57, %v207_v41  ;;  %v3081_v40 = vstv %s1688_s4  ;;  %v3090_v25 = vmov %v3088_v18  ;;  %s3095_s4 = sld [smem:[#allocation13_spill]] }
  0xa9   :  { %v242_v51 = vmul.f32 %v3079_v60, %v238_v46  ;;  %v243_v16 = vmul.f32 %v3080_v39, %v239_v63  ;;  %v248_v28 = vmul.f32 %v3081_v40, %v238_v46  ;;  %v3082_v54 = vmov %v3081_v40 }
  0xaa   :  { %v249_v14 = vmul.f32 %v3082_v54, %v239_v63  ;;  %v254_v41 = vmul.f32 %v3083_v50, %v238_v46  ;;  %v255_v62 = vmul.f32 %v3085_v49, %v239_v63  ;;  %v266_v2 = vmul.f32 %v3086_v36, %v238_v46  ;;  %v331_v42 = vpop.permute.xlu1 %330 }
  0xab   :  { %v267_v47 = vmul.f32 %v3087_v9, %v239_v63  ;;  %v244_v60 = vadd.f32 %v242_v51, %v3088_v18  ;;  %v245_v39 = vadd.f32 %v243_v16, %v3090_v25  ;;  %v3091_v40 = vstv %s1694_s23  ;;  %s3103_s23 = sld [smem:[#allocation15_spill]] }
  0xac   :  { %v250_v15 = vadd.f32 %v248_v28, %v3091_v40  ;;  %v3092_v54 = vmov %v3091_v40  ;;  %v258_v50 = vrot.slane %v254_v41, 2  ;;  %v259_v12 = vrot.slane %v255_v62, 2 }
  0xad   :  { %v251_v0 = vadd.f32 %v249_v14, %v3092_v54  ;;  %v270_v49 = vrot.slane %v266_v2, 2  ;;  %v271_v58 = vrot.slane %v267_v47, 2  ;;  %v476_v9 = vsel %vm474_vm4, %v2172_v61, %v2166_v55 }
  0xae   :  { %v477_v36 = vsel %vm475_vm5, %v2169_v30, %v2163_v34  ;;  %v3093_v25 = vstv %s3084_s3  ;;  %v498_v18 = vsel %vm496_vm6, %v2176_v11, %v476_v9  ;;  %v3096_v47 = vstv %s3089_s26  ;;  %s3106_s26 = sld [smem:[#allocation19_spill]]  ;;  %s3107_s3 = sld [smem:[#allocation20_spill]] }
  0xaf   :  { %v278_v28 = vmul.f32 %v3093_v25, %v238_v46  ;;  %v3094_v62 = vmov %v3093_v25  ;;  %v290_v51 = vmul.f32 %v3096_v47, %v238_v46  ;;  %v3097_v43 = vmov %v3096_v47 }
  0xb0   :  { %v279_v2 = vmul.f32 %v3094_v62, %v239_v63  ;;  %v291_v14 = vmul.f32 %v3097_v43, %v239_v63  ;;  %v499_v44 = vsel %vm497_vm7, %v2179_v1, %v477_v36  ;;  %v946_v41 = vsel %vm944_vm9, %v2169_v30, %v2179_v1 }
  0xb1   :  { %v520_v40 = vsel %vm518_vm10, %v2214_v3, %v498_v18  ;;  %v262_v32 = vadd.f32 %v258_v50, %v244_v60  ;;  %v263_v54 = vadd.f32 %v259_v12, %v245_v39  ;;  %v274_v9 = vadd.f32 %v270_v49, %v250_v15 }
  0xb2   :  { %v275_v27 = vadd.f32 %v271_v58, %v251_v0  ;;  %v282_v36 = vrot.slane %v278_v28, 4  ;;  %v3099_v25 = vstv %s3095_s4  ;;  %v3101_v43 = vstv %s3098_s5  ;;  %s3108_s4 = sld [smem:[#allocation21_spill]]  ;;  %s3113_s5 = sld [smem:[#allocation22_spill]] }
  0xb3   :  { %v2295_v62 = vmul.f32 %v3099_v25, %v238_v46  ;;  %v3100_v4 = vmov %v3099_v25  ;;  %v2303_v24 = vmul.f32 %v3101_v43, %v238_v46  ;;  %v283_v18 = vrot.slane %v279_v2, 4 }
  0xb4   :  { %v2299_v47 = vmul.f32 %v3100_v4, %v239_v63  ;;  %v294_v16 = vrot.slane %v290_v51, 4  ;;  %v295_v60 = vrot.slane %v291_v14, 4  ;;  %v3104_v12 = vmov %v3101_v43 }
  0xb5   :  { %v2308_v58 = vmul.f32 %v3104_v12, %v239_v63  ;;  %v521_v0 = vsel %vm519_vm11, %v2217_v57, %v499_v44  ;;  %v967_v15 = vsel %vm965_vm12, %v2166_v55, %v945_v52  ;;  %v968_v46 = vsel %vm966_vm13, %v2163_v34, %v946_v41 }
  0xb6   :  { %v2320_v50 = vadd.f32 %v282_v36, %v262_v32  ;;  %v2322_v63 = vadd.f32 %v283_v18, %v263_v54  ;;  %v2324_v22 = vadd.f32 %v294_v16, %v274_v9  ;;  %v2326_v49 = vadd.f32 %v295_v60, %v275_v27 }
  0xb7   :  { %v3109_v2 = vstv %s3102_s22  ;;  %v3110_v44 = vstv %s3103_s23  ;;  %v3112_v32 = vstv %s3105_s24  ;;  %vm1223_vm2 = vcmp.eq.s32.totalorder %v1949_v37, 1  ;;  %s3127_s22 = sld [smem:[#allocation27_spill]]  ;;  %s3129_s23 = sld [smem:[#allocation24_spill]] }
  0xb8   :  { %v2333_v51 = vmul.f32 %v3109_v2, %v520_v40  ;;  %v2338_v16 = vmul.f32 %v3110_v44, %v520_v40  ;;  %v3111_v52 = vmov %v3110_v44  ;;  %v2346_v54 = vmul.f32 %v3112_v32, %v520_v40  ;;  %s3130_s24 = sld [smem:[#allocation26_spill]] }
  0xb9   :  { %v2342_v41 = vmul.f32 %v3111_v52, %v521_v0  ;;  %vm1224_vm3 = vcmp.eq.s32.totalorder %v1952_v53, 1  ;;  %v3114_v9 = vmov %v3109_v2  ;;  %v3115_v36 = vstv %s3106_s26  ;;  %s3131_s26 = sld [smem:[#allocation29_spill]] }
  0xba   :  { %v2352_v27 = vmul.f32 %v3114_v9, %v521_v0  ;;  %v2356_v25 = vmul.f32 %v3115_v36, %v520_v40  ;;  %v3117_v4 = vmov %v3115_v36  ;;  %v3118_v18 = vstv %s3107_s3  ;;  %s3132_s3 = sld [smem:[#allocation30_spill]] }
  0xbb   :  { %v2360_v43 = vmul.f32 %v3117_v4, %v521_v0  ;;  %v2364_v60 = vmul.f32 %v3118_v18, %v520_v40  ;;  %vm332_vm4 = vcmask 130048   ;;  %v3119_v12 = vmov %v3112_v32 }
  0xbc   :  { %v2368_v2 = vmul.f32 %v3119_v12, %v521_v0  ;;  %v3120_v44 = vmov %v3118_v18  ;;  %v3121_v32 = vstv %s3108_s4  ;;  %vm1245_vm5 = vcmp.eq.s32.totalorder %v1961_v48, 1  ;;  %s3154_s4 = sld [smem:[#allocation33_spill]] }
  0xbd   :  { %v2372_v52 = vmul.f32 %v3120_v44, %v521_v0  ;;  %v2376_v9 = vmul.f32 %v3121_v32, %v520_v40  ;;  %v3122_v39 = vmov %v3121_v32  ;;  %vm1246_vm6 = vcmp.eq.s32.totalorder %v1964_v38, 1 }
  0xbe   :  { %v2380_v36 = vmul.f32 %v3122_v39, %v521_v0  ;;  %v3123_v18 = vstv %s3113_s5  ;;  %v1204_v44 = vsel %vm1202_vm14, %v2169_v30, %v2217_v57  ;;  %vm342_vm7 = vcmask 916480   ;;  %s3155_s5 = sld [smem:[#allocation34_spill]] }
  0xbf   :  { %v2387_v14 = vmul.f32 %v3123_v18, %v520_v40  ;;  %v3124_v12 = vmov %v3123_v18  ;;  %v3125_v39 = vstv %s3116_s25  ;;  %v2408_v18 = vsel %vm987_vm15, %v2214_v3, %v967_v15  ;;  %s3128_s25 = sld [smem:[#allocation28_spill]] }
  0xc0   :  { %v2391_v28 = vmul.f32 %v3124_v12, %v521_v0  ;;  %v2399_v32 = vmul.f32 %v3125_v39, %v520_v40  ;;  %v3126_v23 = vmov %v3125_v39  ;;  %v2413_v12 = vsel %vm988_vm0, %v2217_v57, %v968_v46  ;;  %v328_v57 = vpop.permute.xlu0 %327 }
  0xc1   :  { %v2403_v33 = vmul.f32 %v3126_v23, %v521_v0  ;;  %vm366_vm9 = vcmp.eq.s32.totalorder %v2059_v21, 1  ;;  %v1203_v23 = vsel %vm1201_vm1, %v2172_v61, %v2214_v3  ;;  %v3133_v29 = vstv %s3127_s22  ;;  %s3157_s22 = sld [smem:[#allocation35_spill]] }
  0xc2   :  { %v2433_v0 = vmul.f32 %v3133_v29, %v2408_v18  ;;  %v3134_v15 = vmov %v3133_v29  ;;  %v3140_v40 = vstv %s3129_s23  ;;  %v3144_v46 = vstv %s3130_s24 }
  0xc3   :  { %v2438_v30 = vmul.f32 %v3134_v15, %v2413_v12  ;;  %v2455_v29 = vmul.f32 %v3140_v40, %v2408_v18  ;;  %v3142_v4 = vmov %v3140_v40  ;;  %v2465_v56 = vmul.f32 %v3144_v46, %v2408_v18 }
  0xc4   :  { %v2460_v15 = vmul.f32 %v3142_v4, %v2413_v12  ;;  %v3146_v35 = vmov %v3144_v46  ;;  %v3148_v59 = vstv %s3131_s26  ;;  %v339_v20 = vpop.permute.xlu0 %338  ;;  %v3161_v48 = vrot.slane %v2303_v24, 6 }
  0xc5   :  { %3135 = vst [vmem:[#allocation64_spill] sm:$0xff] %v2438_v30  ;;  %v3136_v31 = vstv %s3128_s25  ;;  %3141 = vst [vmem:[#allocation67_spill] sm:$0xff] %v2455_v29  ;;  %v3150_v10 = vmov %v3148_v59  ;;  %v3152_v29 = vstv %s3132_s3  ;;  %v3162_v38 = vrot.slane %v2308_v58, 6  ;;  %s3172_s25 = sld [smem:[#allocation36_spill]] }
  0xc6   :  { %v2445_v61 = vmul.f32 %v3136_v31, %v2408_v18  ;;  %v3138_v3 = vmov %v3136_v31  ;;  %3143 = vst [vmem:[#allocation68_spill] sm:$0xff] %v2460_v15  ;;  %3145 = vst [vmem:[#allocation69_spill] sm:$0xff] %v2465_v56  ;;  %v2470_v31 = vmul.f32 %v3146_v35, %v2413_v12  ;;  %v2480_v40 = vmul.f32 %v3150_v10, %v2413_v12 }
  0xc7   :  { %v2450_v39 = vmul.f32 %v3138_v3, %v2413_v12  ;;  %v2475_v3 = vmul.f32 %v3148_v59, %v2408_v18  ;;  %v2485_v4 = vmul.f32 %v3152_v29, %v2408_v18  ;;  %v3153_v15 = vmov %v3152_v29 }
  0xc8   :  { %3137 = vst [vmem:[#allocation65_spill] sm:$0xff] %v2445_v61  ;;  %3147 = vst [vmem:[#allocation70_spill] sm:$0xff] %v2470_v31  ;;  %v2490_v46 = vmul.f32 %v3153_v15, %v2413_v12  ;;  %v1225_v59 = vsel %vm1223_vm2, %v2166_v55, %v1203_v23  ;;  %v1226_v10 = vsel %vm1224_vm3, %v2163_v34, %v1204_v44  ;;  %v341_v31 = vpop.permute.xlu1 %340  ;;  %v3159_v34 = vrot.slane %v2295_v62, 6 }
  0xc9   :  { %3139 = vst [vmem:[#allocation66_spill] sm:$0xff] %v2450_v39  ;;  %3149 = vst [vmem:[#allocation71_spill] sm:$0xff] %v2475_v3  ;;  %v2503_v56 = vsel %vm332_vm4, %v331_v42, %v328_v57  ;;  %v2506_v35 = vsel %vm332_vm4, %v328_v57, %v331_v42  ;;  %v2511_v37 = vsel %vm1245_vm5, %v2176_v11, %v1225_v59  ;;  %v3160_v44 = vrot.slane %v2299_v47, 6 }
  0xca   :  { %3151 = vst [vmem:[#allocation72_spill] sm:$0xff] %v2480_v40  ;;  %3156 = vst [vmem:[#allocation73_spill] sm:$0xff] %v2511_v37  ;;  %v2516_v53 = vsel %vm1246_vm6, %v2179_v1, %v1226_v10  ;;  %v310_v55 = vadd.f32 %v3159_v34, %v2320_v50  ;;  %v322_v11 = vadd.f32 %v3161_v48, %v2324_v22  ;;  %v3167_v34 = vstv %s3157_s22 }
  0xcb   :  { %3158 = vst [vmem:[#allocation74_spill] sm:$0xff] %v2516_v53  ;;  %v311_v42 = vadd.f32 %v3160_v44, %v2322_v63  ;;  %v323_v1 = vadd.f32 %v3162_v38, %v2326_v49  ;;  %v2531_v57 = vsel %vm342_vm7, %v339_v20, %v341_v31  ;;  %v2534_v62 = vsel %vm342_vm7, %v341_v31, %v339_v20 }
  0xcc   :  { %v367_v24 = vsel %vm365_vm8, %v2531_v57, %v2506_v35  ;;  %v368_v58 = vsel %vm366_vm9, %v2534_v62, %v2503_v56  ;;  %v3163_v63 = vstv %s3154_s4  ;;  %v3165_v20 = vstv %s3155_s5 }
  0xcd   :  { %v371_v22 = vmul.f32 %v3163_v63, %v367_v24  ;;  %v3164_v49 = vmov %v3163_v63  ;;  %v377_v31 = vmul.f32 %v3165_v20, %v367_v24  ;;  %v3166_v59 = vmov %v3165_v20 }
  0xce   :  { %v372_v23 = vmul.f32 %v3164_v49, %v368_v58  ;;  %v378_v10 = vmul.f32 %v3166_v59, %v368_v58  ;;  %v383_v44 = vmul.f32 %v3167_v34, %v367_v24  ;;  %v3168_v48 = vmov %v3167_v34 }
  0xcf   :  { %v384_v13 = vmul.f32 %v3168_v48, %v368_v58  ;;  %v3169_v38 = vstv %s1849_s12  ;;  %vm1094_vm10 = vcmp.eq.s32.totalorder %v2064_v5, 1  ;;  %vm1095_vm11 = vcmp.eq.s32.totalorder %v2067_v7, 1  ;;  %s3181_s12 = sld [smem:[#allocation32_spill]] }
  0xd0   :  { %v395_v47 = vmul.f32 %v3169_v38, %v367_v24  ;;  %v3170_v21 = vmov %v3169_v38  ;;  %v373_v63 = vadd.f32 %v371_v22, %v310_v55  ;;  %v374_v49 = vadd.f32 %v372_v23, %v311_v42 }
  0xd1   :  { %v396_v50 = vmul.f32 %v3170_v21, %v368_v58  ;;  %v379_v20 = vadd.f32 %v377_v31, %v322_v11  ;;  %v380_v15 = vadd.f32 %v378_v10, %v323_v1  ;;  %v387_v59 = vrot.slane %v383_v44, 2 }
  0xd2   :  { %v388_v29 = vrot.slane %v384_v13, 2  ;;  %v399_v34 = vrot.slane %v395_v47, 2  ;;  %v3171_v48 = vstv %s1851_s6  ;;  %v3174_v53 = vstv %s1855_s17  ;;  %s3179_s6 = sld [smem:[#allocation31_spill]]  ;;  %s3186_s17 = sld [smem:[#allocation37_spill]] }
  0xd3   :  { %v400_v40 = vrot.slane %v396_v50, 2  ;;  %v407_v3 = vmul.f32 %v3171_v48, %v367_v24  ;;  %v3173_v38 = vmov %v3171_v48  ;;  %v419_v37 = vmul.f32 %v3174_v53, %v367_v24 }
  0xd4   :  { %v408_v21 = vmul.f32 %v3173_v38, %v368_v58  ;;  %v3175_v39 = vmov %v3174_v53  ;;  %v391_v55 = vadd.f32 %v387_v59, %v373_v63  ;;  %v392_v42 = vadd.f32 %v388_v29, %v374_v49  ;;  %v611_v49 = vpop.permute.xlu1 %610 }
  0xd5   :  { %v420_v61 = vmul.f32 %v3175_v39, %v368_v58  ;;  %v403_v11 = vadd.f32 %v399_v34, %v379_v20  ;;  %v404_v1 = vadd.f32 %v400_v40, %v380_v15  ;;  %v411_v22 = vrot.slane %v407_v3, 4 }
  0xd6   :  { %v412_v23 = vrot.slane %v408_v21, 4  ;;  %v423_v31 = vrot.slane %v419_v37, 4  ;;  %vm612_vm12 = vcmask 7168   ;;  %v3176_v50 = vstv %s1863_s18  ;;  %s3248_s18 = sld [smem:[#allocation48_spill]] }
  0xd7   :  { %v424_v47 = vrot.slane %v420_v61, 4  ;;  %v431_v10 = vmul.f32 %v3176_v50, %v367_v24  ;;  %v3177_v44 = vmov %v3176_v50  ;;  %v3178_v48 = vstv %s3172_s25 }
  0xd8   :  { %v432_v13 = vmul.f32 %v3177_v44, %v368_v58  ;;  %v443_v38 = vmul.f32 %v3178_v48, %v367_v24  ;;  %v3180_v30 = vmov %v3178_v48  ;;  %vm622_vm13 = vcmask 1039360   ;;  %v608_v24 = vpop.permute.xlu0 %607 }
  0xd9   :  { %v444_v53 = vmul.f32 %v3180_v30, %v368_v58  ;;  %v415_v39 = vadd.f32 %v411_v22, %v391_v55  ;;  %v416_v40 = vadd.f32 %v412_v23, %v392_v42  ;;  %v427_v3 = vadd.f32 %v423_v31, %v403_v11 }
  0xda   :  { %v428_v29 = vadd.f32 %v424_v47, %v404_v1  ;;  %vm645_vm14 = vcmp.eq.s32.totalorder %v2133_v8, 1  ;;  %vm646_vm15 = vcmp.eq.s32.totalorder %v2151_v26, 1  ;;  %v435_v61 = vrot.slane %v431_v10, 6 }
  0xdb   :  { %v436_v15 = vrot.slane %v432_v13, 6  ;;  %v447_v37 = vrot.slane %v443_v38, 6  ;;  %v448_v63 = vrot.slane %v444_v53, 6  ;;  %v3182_v20 = vstv %s3179_s6  ;;  %v621_v53 = vpop.permute.xlu1 %620 }
  0xdc   :  { %v2585_v30 = vmul.f32 %v3182_v20, %v2408_v18  ;;  %v3183_v58 = vmov %v3182_v20  ;;  %v3184_v34 = vstv %s3181_s12  ;;  %v439_v11 = vadd.f32 %v435_v61, %v415_v39  ;;  %v619_v39 = vpop.permute.xlu0 %618 }
  0xdd   :  { %v2590_v59 = vmul.f32 %v3183_v58, %v2413_v12  ;;  %v2595_v21 = vmul.f32 %v3184_v34, %v2408_v18  ;;  %v3185_v55 = vmov %v3184_v34  ;;  %v440_v1 = vadd.f32 %v436_v15, %v416_v40 }
  0xde   :  { %v2600_v42 = vmul.f32 %v3185_v55, %v2413_v12  ;;  %v451_v22 = vadd.f32 %v447_v37, %v427_v3  ;;  %v452_v23 = vadd.f32 %v448_v63, %v428_v29  ;;  %v1045_v31 = vrot.slane %v2485_v4, 4 }
  0xdf   :  { %v1046_v47 = vrot.slane %v2490_v46, 4  ;;  %v2608_v50 = vsel %vm1094_vm10, %v2506_v35, %v2531_v57  ;;  %v2614_v18 = vsel %vm1095_vm11, %v2503_v56, %v2534_v62  ;;  %v526_v12 = vadd.f32 %v2338_v16, %v439_v11 }
  0xe0   :  { %v527_v10 = vadd.f32 %v2342_v41, %v440_v1  ;;  %v532_v44 = vadd.f32 %v2346_v54, %v451_v22  ;;  %v533_v5 = vadd.f32 %v2368_v2, %v452_v23  ;;  %v1057_v35 = vrot.slane %v2585_v30, 6 }
  0xe1   :  { %v1058_v57 = vrot.slane %v2590_v59, 6  ;;  %v1069_v7 = vrot.slane %v2595_v21, 6  ;;  %v1070_v56 = vrot.slane %v2600_v42, 6  ;;  %v3187_v62 = vrot.slane %v2333_v51, 2 }
  0xe2   :  { %v3188_v16 = vrot.slane %v2352_v27, 2  ;;  %v3189_v41 = vrot.slane %v2356_v25, 2  ;;  %v3190_v54 = vrot.slane %v2360_v43, 2  ;;  %v3191_v40 = vstv %s3186_s17 }
  0xe3   :  { %v544_v13 = vadd.f32 %v3187_v62, %v526_v12  ;;  %v2635_v3 = vmul.f32 %v3191_v40, %v2608_v50  ;;  %v3192_v29 = vmov %v3191_v40  ;;  %v3193_v51 = vstv %s1876_s11  ;;  %s3241_s11 = sld [smem:[#allocation46_spill]] }
  0xe4   :  { %v545_v48 = vadd.f32 %v3188_v16, %v527_v10  ;;  %v556_v38 = vadd.f32 %v3189_v41, %v532_v44  ;;  %v557_v2 = vadd.f32 %v3190_v54, %v533_v5  ;;  %v2640_v61 = vmul.f32 %v3192_v29, %v2614_v18 }
  0xe5   :  { %v2645_v27 = vmul.f32 %v3193_v51, %v2608_v50  ;;  %v3194_v25 = vmov %v3193_v51  ;;  %v613_v43 = vsel %vm612_vm12, %v611_v49, %v608_v24  ;;  %v616_v37 = vsel %vm612_vm12, %v608_v24, %v611_v49 }
  0xe6   :  { %v2650_v15 = vmul.f32 %v3194_v25, %v2614_v18  ;;  %v3195_v63 = vrot.slane %v2364_v60, 4  ;;  %v3196_v58 = vrot.slane %v2372_v52, 4  ;;  %v3197_v55 = vrot.slane %v2376_v9, 4 }
  0xe7   :  { %v3198_v1 = vrot.slane %v2380_v36, 4  ;;  %v623_v23 = vsel %vm622_vm13, %v619_v39, %v621_v53  ;;  %v627_v49 = vsel %vm622_vm13, %v621_v53, %v619_v39  ;;  %v3199_v60 = vrot.slane %v2387_v14, 6 }
  0xe8   :  { %v568_v20 = vadd.f32 %v3195_v63, %v544_v13  ;;  %v569_v34 = vadd.f32 %v3196_v58, %v545_v48  ;;  %v580_v11 = vadd.f32 %v3197_v55, %v556_v38  ;;  %v3200_v52 = vrot.slane %v2391_v28, 6 }
  0xe9   :  { %v581_v22 = vadd.f32 %v3198_v1, %v557_v2  ;;  %v647_v9 = vsel %vm645_vm14, %v623_v23, %v616_v37  ;;  %v648_v36 = vsel %vm646_vm15, %v627_v49, %v613_v43  ;;  %vm836_vm0 = vcmp.eq.s32.totalorder %v2188_v45, 1 }
  0xea   :  { %v592_v24 = vadd.f32 %v3199_v60, %v568_v20  ;;  %v593_v12 = vadd.f32 %v3200_v52, %v569_v34  ;;  %vm837_vm1 = vcmp.eq.s32.totalorder %v2191_v19, 1  ;;  %v3201_v10 = vrot.slane %v2399_v32, 6 }
  0xeb   :  { %v3202_v14 = vrot.slane %v2403_v33, 6  ;;  %v3203_v28 = vstv %s1902_s0  ;;  %v3205_v16 = vstv %s1904_s8  ;;  %v3207_v38 = vstv %s1914_s7  ;;  %s3222_s7 = sld [smem:[#allocation45_spill]]  ;;  %s3225_s8 = sld [smem:[#allocation42_spill]] }
  0xec   :  { %v604_v44 = vadd.f32 %v3201_v10, %v580_v11  ;;  %v651_v62 = vmul.f32 %v3203_v28, %v647_v9  ;;  %v3204_v13 = vmov %v3203_v28  ;;  %v657_v48 = vmul.f32 %v3205_v16, %v647_v9  ;;  %s3228_s0 = sld [smem:[#allocation43_spill]] }
  0xed   :  { %v605_v5 = vadd.f32 %v3202_v14, %v581_v22  ;;  %v652_v8 = vmul.f32 %v3204_v13, %v648_v36  ;;  %v3206_v26 = vmov %v3205_v16  ;;  %v663_v54 = vmul.f32 %v3207_v38, %v647_v9 }
  0xee   :  { %v658_v41 = vmul.f32 %v3206_v26, %v648_v36  ;;  %v3208_v2 = vmov %v3207_v38  ;;  %v653_v32 = vadd.f32 %v651_v62, %v592_v24  ;;  %v3209_v33 = vstv %s1916_s30  ;;  %s3215_s30 = sld [smem:[#allocation38_spill]] }
  0xef   :  { %v664_v53 = vmul.f32 %v3208_v2, %v648_v36  ;;  %v654_v39 = vadd.f32 %v652_v8, %v593_v12  ;;  %v675_v40 = vmul.f32 %v3209_v33, %v647_v9  ;;  %v3210_v29 = vmov %v3209_v33 }
  0xf0   :  { %v676_v51 = vmul.f32 %v3210_v29, %v648_v36  ;;  %v659_v25 = vadd.f32 %v657_v48, %v604_v44  ;;  %v660_v63 = vadd.f32 %v658_v41, %v605_v5  ;;  %v667_v20 = vrot.slane %v663_v54, 2 }
  0xf1   :  { %v668_v58 = vrot.slane %v664_v53, 2  ;;  %v679_v34 = vrot.slane %v675_v40, 2  ;;  %v3211_v11 = vstv %s1930_s2  ;;  %v3213_v12 = vstv %s1932_s29  ;;  %s3218_s2 = sld [smem:[#allocation39_spill]]  ;;  %s3221_s29 = sld [smem:[#allocation44_spill]] }
  0xf2   :  { %v680_v55 = vrot.slane %v676_v51, 2  ;;  %v687_v1 = vmul.f32 %v3211_v11, %v647_v9  ;;  %v3212_v22 = vmov %v3211_v11  ;;  %v671_v24 = vadd.f32 %v667_v20, %v653_v32 }
  0xf3   :  { %v688_v60 = vmul.f32 %v3212_v22, %v648_v36  ;;  %v672_v52 = vadd.f32 %v668_v58, %v654_v39  ;;  %v699_v10 = vmul.f32 %v3213_v12, %v647_v9  ;;  %v3214_v14 = vmov %v3213_v12 }
  0xf4   :  { %v700_v28 = vmul.f32 %v3214_v14, %v648_v36  ;;  %v683_v44 = vadd.f32 %v679_v34, %v659_v25  ;;  %v684_v5 = vadd.f32 %v680_v55, %v660_v63  ;;  %v691_v62 = vrot.slane %v687_v1, 4 }
  0xf5   :  { %v692_v13 = vrot.slane %v688_v60, 4  ;;  %v703_v8 = vrot.slane %v699_v10, 4  ;;  %v3216_v48 = vstv %s1979_s20  ;;  %v3219_v53 = vstv %s1984_s21  ;;  %s3273_s20 = sld [smem:[#allocation41_spill]]  ;;  %s3274_s21 = sld [smem:[#allocation40_spill]] }
  0xf6   :  { %v704_v16 = vrot.slane %v700_v28, 4  ;;  %v711_v26 = vmul.f32 %v3216_v48, %v647_v9  ;;  %v3217_v41 = vmov %v3216_v48  ;;  %v695_v54 = vadd.f32 %v691_v62, %v671_v24  ;;  %v3231_v28 = vld [vmem:[#allocation62_spill] sm:$0xff] }
  0xf7   :  { %v712_v38 = vmul.f32 %v3217_v41, %v648_v36  ;;  %v696_v2 = vadd.f32 %v692_v13, %v672_v52  ;;  %v723_v32 = vmul.f32 %v3219_v53, %v647_v9  ;;  %v3220_v39 = vmov %v3219_v53 }
  0xf8   :  { %v724_v33 = vmul.f32 %v3220_v39, %v648_v36  ;;  %v707_v40 = vadd.f32 %v703_v8, %v683_v44  ;;  %v708_v29 = vadd.f32 %v704_v16, %v684_v5  ;;  %v715_v51 = vrot.slane %v711_v26, 6  ;;  %v3232_v5 = vld [vmem:[#allocation51_spill] sm:$0xff] }
  0xf9   :  { %v716_v25 = vrot.slane %v712_v38, 6  ;;  %v727_v63 = vrot.slane %v723_v32, 6  ;;  %v838_v58 = vsel %vm836_vm0, %v616_v37, %v623_v23  ;;  %v839_v34 = vsel %vm837_vm1, %v613_v43, %v627_v49  ;;  %v3235_v26 = vld [vmem:[#allocation55_spill] sm:$0xff] }
  0xfa   :  { %v728_v20 = vrot.slane %v724_v33, 6  ;;  %v3223_v55 = vstv %s3215_s30  ;;  %v719_v1 = vadd.f32 %v715_v51, %v695_v54  ;;  %v3226_v60 = vstv %s3218_s2  ;;  %v3237_v54 = vld [vmem:[#allocation47_spill] sm:$0xff]  ;;  %v3244_v51 = vld [vmem:[#allocation49_spill] sm:$0xff] }
  0xfb   :  { %v2717_v9 = vmul.f32 %v3223_v55, %v2608_v50  ;;  %v3224_v36 = vmov %v3223_v55  ;;  %v720_v22 = vadd.f32 %v716_v25, %v696_v2  ;;  %v2727_v45 = vmul.f32 %v3226_v60, %v2608_v50  ;;  %v3242_v33 = vld [vmem:[#allocation56_spill] sm:$0xff] }
  0xfc   :  { %v2722_v11 = vmul.f32 %v3224_v36, %v2614_v18  ;;  %v3227_v19 = vmov %v3226_v60  ;;  %v731_v37 = vadd.f32 %v727_v63, %v707_v40  ;;  %v732_v23 = vadd.f32 %v728_v20, %v708_v29 }
  0xfd   :  { %v2732_v43 = vmul.f32 %v3227_v19, %v2614_v18  ;;  %v737_v49 = vadd.f32 %v2138_v6, %v719_v1  ;;  %v738_v24 = vadd.f32 %v2041_v17, %v720_v22  ;;  %v3229_v52 = vstv %s3221_s29  ;;  %v3249_v22 = vld [vmem:[#allocation57_spill] sm:$0xff] }
  0xfe   :  { %v854_v12 = vmul.f32 %v3229_v52, %v838_v58  ;;  %v3230_v10 = vmov %v3229_v52  ;;  %v743_v44 = vadd.f32 %v3231_v28, %v731_v37  ;;  %v744_v62 = vadd.f32 %v3232_v5, %v732_v23  ;;  %v3251_v37 = vld [vmem:[#allocation50_spill] sm:$0xff]  ;;  %v3255_v5 = vld [vmem:[#allocation52_spill] sm:$0xff] }
  0xff   :  { %v855_v14 = vmul.f32 %v3230_v10, %v839_v34  ;;  %v3233_v13 = vstv %s3222_s7  ;;  %v3236_v41 = vrot.slane %v3235_v26, 2  ;;  %v3238_v2 = vrot.slane %v3237_v54, 2  ;;  %v3253_v10 = vld [vmem:[#allocation58_spill] sm:$0xff] }
 0x100   :  { %v866_v8 = vmul.f32 %v3233_v13, %v838_v58  ;;  %v3234_v16 = vmov %v3233_v13  ;;  %v3239_v53 = vstv %s3225_s8  ;;  %v3243_v40 = vrot.slane %v3242_v33, 2 }
 0x101   :  { %v867_v48 = vmul.f32 %v3234_v16, %v839_v34  ;;  %v755_v38 = vadd.f32 %v3236_v41, %v737_v49  ;;  %v756_v6 = vadd.f32 %v3238_v2, %v738_v24  ;;  %v842_v17 = vmul.f32 %v3239_v53, %v838_v58  ;;  %v3257_v41 = vld [vmem:[#allocation59_spill] sm:$0xff]  ;;  %v3259_v2 = vld [vmem:[#allocation53_spill] sm:$0xff] }
 0x102   :  { %v3240_v32 = vmov %v3239_v53  ;;  %v767_v29 = vadd.f32 %v3243_v40, %v743_v44  ;;  %v3245_v25 = vrot.slane %v3244_v51, 2  ;;  %v3246_v20 = vstv %s3228_s0  ;;  %v3263_v40 = vld [vmem:[#allocation60_spill] sm:$0xff] }
 0x103   :  { %v843_v39 = vmul.f32 %v3240_v32, %v839_v34  ;;  %v848_v55 = vmul.f32 %v3246_v20, %v838_v58  ;;  %v3247_v36 = vmov %v3246_v20  ;;  %v3250_v60 = vrot.slane %v3249_v22, 4 }
 0x104   :  { %v768_v63 = vadd.f32 %v3245_v25, %v744_v62  ;;  %v849_v1 = vmul.f32 %v3247_v36, %v839_v34  ;;  %v3252_v23 = vrot.slane %v3251_v37, 4  ;;  %v858_v24 = vrot.slane %v854_v12, 2  ;;  %v3265_v25 = vld [vmem:[#allocation54_spill] sm:$0xff] }
 0x105   :  { %v779_v19 = vadd.f32 %v3250_v60, %v755_v38  ;;  %v859_v52 = vrot.slane %v855_v14, 2  ;;  %v3254_v28 = vrot.slane %v3253_v10, 4  ;;  %v3256_v62 = vrot.slane %v3255_v5, 4 }
 0x106   :  { %v780_v49 = vadd.f32 %v3252_v23, %v756_v6  ;;  %v870_v16 = vrot.slane %v866_v8, 2  ;;  %v871_v26 = vrot.slane %v867_v48, 2  ;;  %v3258_v54 = vrot.slane %v3257_v41, 6 }
 0x107   :  { %v791_v44 = vadd.f32 %v3254_v28, %v767_v29  ;;  %v792_v13 = vadd.f32 %v3256_v62, %v768_v63  ;;  %v3260_v53 = vrot.slane %v3259_v2, 6  ;;  %v3261_v12 = vstv %s3241_s11 }
 0x108   :  { %v803_v38 = vadd.f32 %v3258_v54, %v779_v19  ;;  %v878_v32 = vmul.f32 %v3261_v12, %v838_v58  ;;  %v3262_v14 = vmov %v3261_v12  ;;  %v3264_v51 = vrot.slane %v3263_v40, 6 }
 0x109   :  { %v804_v6 = vadd.f32 %v3260_v53, %v780_v49  ;;  %v879_v33 = vmul.f32 %v3262_v14, %v839_v34  ;;  %v3266_v20 = vrot.slane %v3265_v25, 6  ;;  %v3267_v8 = vstv %s3248_s18 }
 0x10a   :  { %v815_v29 = vadd.f32 %v3264_v51, %v791_v44  ;;  %v890_v36 = vmul.f32 %v3267_v8, %v838_v58  ;;  %v3268_v48 = vmov %v3267_v8  ;;  %v844_v60 = vadd.f32 %v842_v17, %v803_v38 }
 0x10b   :  { %v816_v63 = vadd.f32 %v3266_v20, %v792_v13  ;;  %v891_v22 = vmul.f32 %v3268_v48, %v839_v34  ;;  %v845_v37 = vadd.f32 %v843_v39, %v804_v6  ;;  %v3269_v19 = vstv %s2051_s27 }
 0x10c   :  { %v902_v23 = vmul.f32 %v3269_v19, %v838_v58  ;;  %v3270_v10 = vmov %v3269_v19  ;;  %v850_v28 = vadd.f32 %v848_v55, %v815_v29  ;;  %v3271_v62 = vstv %s2053_s19 }
 0x10d   :  { %v903_v49 = vmul.f32 %v3270_v10, %v839_v34  ;;  %v851_v5 = vadd.f32 %v849_v1, %v816_v63  ;;  %v914_v41 = vmul.f32 %v3271_v62, %v838_v58  ;;  %v3272_v54 = vmov %v3271_v62 }
 0x10e   :  { %v915_v2 = vmul.f32 %v3272_v54, %v839_v34  ;;  %v862_v44 = vadd.f32 %v858_v24, %v844_v60  ;;  %v863_v53 = vadd.f32 %v859_v52, %v845_v37  ;;  %v882_v12 = vrot.slane %v878_v32, 4 }
 0x10f   :  { %v883_v13 = vrot.slane %v879_v33, 4  ;;  %v874_v14 = vadd.f32 %v870_v16, %v850_v28  ;;  %v875_v40 = vadd.f32 %v871_v26, %v851_v5  ;;  %v894_v17 = vrot.slane %v890_v36, 4  ;;  %v3282_v5 = vld [vmem:[#allocation70_spill] sm:$0xff] }
 0x110   :  { %v895_v39 = vrot.slane %v891_v22, 4  ;;  %v886_v38 = vadd.f32 %v882_v12, %v862_v44  ;;  %v906_v51 = vrot.slane %v902_v23, 6  ;;  %v907_v25 = vrot.slane %v903_v49, 6  ;;  %v3278_v22 = vld [vmem:[#allocation68_spill] sm:$0xff]  ;;  %v3281_v49 = vld [vmem:[#allocation69_spill] sm:$0xff] }
 0x111   :  { %v887_v6 = vadd.f32 %v883_v13, %v863_v53  ;;  %v898_v55 = vadd.f32 %v894_v17, %v874_v14  ;;  %v918_v58 = vrot.slane %v914_v41, 6  ;;  %v919_v34 = vrot.slane %v915_v2, 6  ;;  %v3284_v41 = vld [vmem:[#allocation64_spill] sm:$0xff]  ;;  %v3288_v14 = vld [vmem:[#allocation65_spill] sm:$0xff] }
 0x112   :  { %v899_v1 = vadd.f32 %v895_v39, %v875_v40  ;;  %v1116_v24 = vrot.slane %v2717_v9, 2  ;;  %v1117_v52 = vrot.slane %v2722_v11, 2  ;;  %v910_v16 = vadd.f32 %v906_v51, %v886_v38  ;;  %v3277_v9 = vld [vmem:[#allocation67_spill] sm:$0xff]  ;;  %v3290_v39 = vld [vmem:[#allocation66_spill] sm:$0xff] }
 0x113   :  { %v911_v26 = vadd.f32 %v907_v25, %v887_v6  ;;  %v3275_v32 = vstv %s3273_s20  ;;  %v922_v63 = vadd.f32 %v918_v58, %v898_v55  ;;  %v1128_v36 = vrot.slane %v2727_v45, 2  ;;  %v3292_v25 = vld [vmem:[#allocation73_spill] sm:$0xff]  ;;  %v3294_v58 = vld [vmem:[#allocation74_spill] sm:$0xff] }
 0x114   :  { %v1148_v33 = vmul.f32 %v3275_v32, %v2608_v50  ;;  %v3276_v29 = vmov %v3275_v32  ;;  %v923_v8 = vadd.f32 %v919_v34, %v899_v1  ;;  %v1129_v48 = vrot.slane %v2732_v43, 2 }
 0x115   :  { %v1149_v20 = vmul.f32 %v3276_v29, %v2614_v18  ;;  %v995_v11 = vadd.f32 %v3277_v9, %v910_v16  ;;  %v996_v60 = vadd.f32 %v3278_v22, %v911_v26  ;;  %v3279_v37 = vstv %s3274_s21  ;;  %v3296_v26 = vld [vmem:[#allocation71_spill] sm:$0xff] }
 0x116   :  { %v1136_v19 = vmul.f32 %v3279_v37, %v2608_v50  ;;  %v3280_v23 = vmov %v3279_v37  ;;  %v1001_v28 = vadd.f32 %v3281_v49, %v922_v63  ;;  %v1002_v62 = vadd.f32 %v3282_v5, %v923_v8  ;;  %v3298_v63 = vld [vmem:[#allocation72_spill] sm:$0xff] }
 0x117   :  { %v1137_v10 = vmul.f32 %v3280_v23, %v2614_v18  ;;  %v3283_v45 = vrot.slane %v2433_v0, 2  ;;  %v3285_v54 = vrot.slane %v3284_v41, 2  ;;  %v3286_v44 = vstv %s2094_s15 }
 0x118   :  { %v1172_v53 = vmul.f32 %v3286_v44, %v2608_v50  ;;  %v3287_v12 = vmov %v3286_v44  ;;  %v3289_v40 = vrot.slane %v3288_v14, 2  ;;  %v3291_v38 = vrot.slane %v3290_v39, 2 }
 0x119   :  { %v1013_v43 = vadd.f32 %v3283_v45, %v995_v11  ;;  %v1014_v2 = vadd.f32 %v3285_v54, %v996_v60  ;;  %v1173_v13 = vmul.f32 %v3287_v12, %v2614_v18  ;;  %v1152_v51 = vrot.slane %v1148_v33, 4 }
 0x11a   :  { %v1025_v17 = vadd.f32 %v3289_v40, %v1001_v28  ;;  %v1026_v6 = vadd.f32 %v3291_v38, %v1002_v62  ;;  %v1153_v0 = vrot.slane %v1149_v20, 4  ;;  %v3293_v55 = vstv %s2096_s16 }
 0x11b   :  { %v1257_v1 = vmul.f32 %v3293_v55, %v3292_v25  ;;  %v3295_v34 = vmov %v3293_v55  ;;  %v3297_v32 = vrot.slane %v3296_v26, 4  ;;  %v3299_v8 = vrot.slane %v3298_v63, 4 }
 0x11c   :  { %v1258_v16 = vmul.f32 %v3295_v34, %v3294_v58  ;;  %v1049_v33 = vadd.f32 %v1045_v31, %v1025_v17  ;;  %v1050_v20 = vadd.f32 %v1046_v47, %v1026_v6  ;;  %v3300_v11 = vstv %s2108_s10  ;;  %s3311_s10 = sld [smem:[#allocation61_spill]] }
 0x11d   :  { %v1037_v29 = vadd.f32 %v3297_v32, %v1013_v43  ;;  %v1038_v9 = vadd.f32 %v3299_v8, %v1014_v2  ;;  %v1275_v22 = vmul.f32 %v3300_v11, %v3292_v25  ;;  %v3301_v60 = vmov %v3300_v11 }
 0x11e   :  { %v1276_v37 = vmul.f32 %v3301_v60, %v3294_v58  ;;  %v1176_v23 = vrot.slane %v1172_v53, 6  ;;  %v1177_v49 = vrot.slane %v1173_v13, 6  ;;  %v1073_v4 = vadd.f32 %v1069_v7, %v1049_v33 }
 0x11f   :  { %v1061_v28 = vadd.f32 %v1057_v35, %v1037_v29  ;;  %v1062_v5 = vadd.f32 %v1058_v57, %v1038_v9  ;;  %v1074_v46 = vadd.f32 %v1070_v56, %v1050_v20  ;;  %v3302_v31 = vstv %s2110_s9  ;;  %s3308_s9 = sld [smem:[#allocation63_spill]] }
 0x120   :  { %v1299_v47 = vmul.f32 %v3302_v31, %v3292_v25  ;;  %v3303_v62 = vmov %v3302_v31  ;;  %v3304_v59 = vstv %s2254_s1  ;;  %v1108_v42 = vadd.f32 %v2645_v27, %v1073_v4 }
 0x121   :  { %v1300_v45 = vmul.f32 %v3303_v62, %v3294_v58  ;;  %v1102_v30 = vadd.f32 %v2635_v3, %v1061_v28  ;;  %v1103_v35 = vadd.f32 %v2640_v61, %v1062_v5  ;;  %v1160_v57 = vmul.f32 %v3304_v59, %v2608_v50 }
 0x122   :  { %v3305_v21 = vmov %v3304_v59  ;;  %v1109_v56 = vadd.f32 %v2650_v15, %v1074_v46  ;;  %v1279_v43 = vrot.slane %v1275_v22, 2  ;;  %v1280_v41 = vrot.slane %v1276_v37, 2  ;;  %v1342_v59 = vpop.permute.xlu1 %1341 }
 0x123   :  { %v1161_v7 = vmul.f32 %v3305_v21, %v2614_v18  ;;  %v1120_v54 = vadd.f32 %v1116_v24, %v1102_v30  ;;  %v1121_v2 = vadd.f32 %v1117_v52, %v1103_v35  ;;  %v1140_v44 = vrot.slane %v1136_v19, 4 }
 0x124   :  { %v1141_v3 = vrot.slane %v1137_v10, 4  ;;  %v1132_v61 = vadd.f32 %v1128_v36, %v1108_v42  ;;  %v1133_v53 = vadd.f32 %v1129_v48, %v1109_v56  ;;  %v3306_v50 = vstv %s2146_s28 }
 0x125   :  { %v1263_v12 = vmul.f32 %v3306_v50, %v3292_v25  ;;  %v3307_v18 = vmov %v3306_v50  ;;  %v1144_v13 = vadd.f32 %v1140_v44, %v1120_v54  ;;  %v1164_v14 = vrot.slane %v1160_v57, 6  ;;  %v3318_v54 = vld [vmem:[#allocation17_spill] sm:$0xff] }
 0x126   :  { %v1264_v27 = vmul.f32 %v3307_v18, %v3294_v58  ;;  %v1145_v15 = vadd.f32 %v1141_v3, %v1121_v2  ;;  %v1165_v40 = vrot.slane %v1161_v7, 6  ;;  %v1156_v24 = vadd.f32 %v1152_v51, %v1132_v61  ;;  %v1363_v50 = vpop.permute.xlu1 %1362 }
 0x127   :  { %v1157_v52 = vadd.f32 %v1153_v0, %v1133_v53  ;;  %v3309_v19 = vstv %s2126_s13  ;;  %v1168_v17 = vadd.f32 %v1164_v14, %v1144_v13  ;;  %v3312_v38 = vstv %s2148_s14  ;;  %s1584_s13 = smov [#allocation7]  }
 0x128   :  { %v1251_v10 = vmul.f32 %v3309_v19, %v3292_v25  ;;  %v3310_v36 = vmov %v3309_v19  ;;  %v1169_v39 = vadd.f32 %v1165_v40, %v1145_v15  ;;  %v1287_v6 = vmul.f32 %v3312_v38, %v3292_v25  ;;  %s1414_s14 = sshll.u32 %s1584_s13, 4  ;;  %s1415_s14 = int_to_ptr.vmem [resolvable:$true] %s1414_s14 }
 0x129   :  { %v1252_v48 = vmul.f32 %v3310_v36, %v3294_v58  ;;  %v3313_v55 = vmov %v3312_v38  ;;  %v1180_v26 = vadd.f32 %v1176_v23, %v1156_v24  ;;  %v1181_v32 = vadd.f32 %v1177_v49, %v1157_v52  ;;  %s1544_s28 = scalar_lea.vmem %s1415_s14, 512  ;;  %p1549_p11 = scmp.lt.s32.totalorder %s1415_s14, %s1415_s14 }
 0x12a   :  { %v1288_v34 = vmul.f32 %v3313_v55, %v3294_v58  ;;  %v1267_v51 = vrot.slane %v1263_v12, 2  ;;  %v1268_v0 = vrot.slane %v1264_v27, 2  ;;  %v1253_v29 = vadd.f32 %v1251_v10, %v1168_v17  ;;  %v3319_v12 = vld [vmem:[#allocation25_spill] sm:$0xff]  ;;  %p1545_p10 = scmp.ne.s32.totalorder %s1415_s14, %s1544_s28  ;;  %p1550_p12 = scmp.lt.s32.totalorder %s1544_s28, %s1544_s28 }
 0x12b   :  { %v1254_v63 = vadd.f32 %v1252_v48, %v1169_v39  ;;  %v3314_v8 = vstv %s3308_s9  ;;  %v1259_v11 = vadd.f32 %v1257_v1, %v1180_v26  ;;  %v1260_v22 = vadd.f32 %v1258_v16, %v1181_v32 }
 0x12c   :  { %v1311_v9 = vmul.f32 %v3314_v8, %v3292_v25  ;;  %v3315_v33 = vmov %v3314_v8  ;;  %v3316_v60 = vstv %s3311_s10  ;;  %v1271_v23 = vadd.f32 %v1267_v51, %v1253_v29  ;;  %p1551_p13 = por %p1550_p12, %p1549_p11 }
 0x12d   :  { %v1312_v20 = vmul.f32 %v3315_v33, %v3294_v58  ;;  %v1323_v37 = vmul.f32 %v3316_v60, %v3292_v25  ;;  %v3317_v28 = vmov %v3316_v60  ;;  %v1272_v49 = vadd.f32 %v1268_v0, %v1254_v63 }
 0x12e   :  { %v1324_v5 = vmul.f32 %v3317_v28, %v3294_v58  ;;  %v1291_v4 = vrot.slane %v1287_v6, 4  ;;  %v1292_v46 = vrot.slane %v1288_v34, 4  ;;  %v1283_v31 = vadd.f32 %v1279_v43, %v1259_v11  ;;  %p1552_p0 = pnand %p1551_p13, %p1545_p10 }
 0x12f   :  { %v1284_v62 = vadd.f32 %v1280_v41, %v1260_v22  ;;  %v1303_v30 = vrot.slane %v1299_v47, 4  ;;  %v1304_v35 = vrot.slane %v1300_v45, 4  ;;  %v1315_v7 = vrot.slane %v1311_v9, 6  ;;  %v1347_v45 = vpop.permute.xlu0 %1346 }
 0x130   :  { %v1295_v57 = vadd.f32 %v1291_v4, %v1271_v23  ;;  %v1296_v21 = vadd.f32 %v1292_v46, %v1272_v49  ;;  %v1316_v1 = vrot.slane %v1312_v20, 6  ;;  %v1327_v56 = vrot.slane %v1323_v37, 6 }
 0x131   :  { %v1307_v16 = vadd.f32 %v1303_v30, %v1283_v31  ;;  %v1308_v42 = vadd.f32 %v1304_v35, %v1284_v62  ;;  %v1328_v25 = vrot.slane %v1324_v5, 6  ;;  %v1383_v2 = vsub.s32 1, %v3318_v54 }
 0x132   :  { %v1319_v58 = vadd.f32 %v1315_v7, %v1295_v57  ;;  %v1320_v44 = vadd.f32 %v1316_v1, %v1296_v21 }
 0x133   :  { %v1331_v3 = vadd.f32 %v1327_v56, %v1307_v16  ;;  %v1332_v61 = vadd.f32 %v1328_v25, %v1308_v42 }
 0x134   :  { %v1333_v53 = vmax.f32 %v1319_v58, 0.0  ;;  %v1334_v43 = vmax.f32 %v1320_v44, 0.0 }
 0x135   :  { %v1335_v41 = vmax.f32 %v1331_v3, 0.0  ;;  %v1336_v47 = vmax.f32 %v1332_v61, 0.0 }
 0x136   :  { %v1352_v18 = vrot.slane %v1333_v53, %v3319_v12  ;;  %v1356_v27 = vrot.slane %v1334_v43, %v3319_v12  ;;  %v1384_v13 = vrot.slane %v1333_v53, %v1383_v2  ;;  %v1388_v15 = vrot.slane %v1334_v43, %v1383_v2 }
 0x137   :  { %v1368_v14 = vrot.slane %v1335_v41, %v3319_v12  ;;  %v1372_v40 = vrot.slane %v1336_v47, %v3319_v12  ;;  %v1396_v24 = vrot.slane %v1335_v41, %v1383_v2  ;;  %v1400_v52 = vrot.slane %v1336_v47, %v1383_v2 }
 0x138   :  { %v1357_v19 = vmul.f32 %v1352_v18, %v1347_v45  ;;  %v1358_v10 = vmul.f32 %v1356_v27, %v1347_v45  ;;  %v1389_v36 = vmul.f32 %v1384_v13, %v1347_v45  ;;  %v1390_v48 = vmul.f32 %v1388_v15, %v1347_v45 }
 0x139   :  { %v1373_v17 = vmul.f32 %v1368_v14, %v1363_v50  ;;  %v1374_v39 = vmul.f32 %v1372_v40, %v1363_v50  ;;  %v1401_v38 = vmul.f32 %v1396_v24, %v1363_v50  ;;  %v1402_v6 = vmul.f32 %v1400_v52, %v1363_v50 }
 0x13a   :  { %v1359_v55 = vadd.f32 %v1357_v19, %v1342_v59  ;;  %v1360_v34 = vadd.f32 %v1358_v10, %v1342_v59  ;;  %v1391_v26 = vadd.f32 %v1389_v36, %v1342_v59  ;;  %v1392_v32 = vadd.f32 %v1390_v48, %v1342_v59 }
 0x13c   :  { %v1375_v51 = vadd.f32 %v1373_v17, %v1359_v55  ;;  %v1376_v0 = vadd.f32 %v1374_v39, %v1360_v34  ;;  %v1403_v29 = vadd.f32 %v1401_v38, %v1391_v26  ;;  %v1404_v63 = vadd.f32 %v1402_v6, %v1392_v32 }
 0x13e   :  { %v1377_v8 = vmax.f32 %v1375_v51, 0.0  ;;  %v1378_v9 = vmax.f32 %v1376_v0, 0.0  ;;  %v1405_v33 = vmax.f32 %v1403_v29, 0.0  ;;  %v1406_v20 = vmax.f32 %v1404_v63, 0.0 }
 0x140   :  { %1379 = vst [vmem:[#allocation7] sm:$0xff] %v1377_v8  ;;  %1380 = vst [vmem:[#allocation7 + $0x8] sm:$0xff] %v1378_v9 }
 0x141   :  { %1407 = vst [vmem:[#allocation7 + $0x10] sm:$0xff] %v1405_v33  ;;  %1408 = vst [vmem:[#allocation7 + $0x18] sm:$0xff] %v1406_v20 }
 0x142   :  { %1555 = shalt.err (!%p1552_p0)
}
 0x143   :  { %s3320_s15 = sld [smem:[#allocation75_spill]] }
 0x149   :  { %s1556_s16 = scalar_lea.hbm %s3320_s15, 512 }
 0x14a   :  { %p1557_p1 = scmp.ne.s32.totalorder %s3320_s15, %s1556_s16  ;;  %p1560_p2 = scmp.lt.u32.totalorder %s1556_s16, %s3320_s15 }
 0x14c   :  { %p1562_p3 = pnand %p1560_p2, %p1557_p1 }
 0x14e   :  { %1565 = shalt.err (!%p1562_p3)
}
 0x14f   :  { %s1585_s3 = smov 256   ;;  %s3321_s4 = smov 16  }
 0x150   :  { %1420 = dma.vmem_to_hbm [thread:$0]  %s1415_s14, 512, %s3320_s15, [#allocation3], %s1585_s3, %s1585_s3, %s3321_s4  }
 0x151   :  { %1570 = dma.done.wait [#allocation3], 512  }
 0x152   :  { %1571 = vsyncadd [#allocation3], 4294966784 }
 0x153   :  { %1424 = vsyncpa [#allocation3], 1 }
 0x154   :  { %1425 = vsyncpa [#allocation4], 1 }
 0x155   :  { %1426 = vsyncpa [#allocation6], 1 }

</bundles_post_ra>
